<compile_context>
chip_gen: v6e
topology: v6e:2x2x1
jax: 0.10.0
libtpu: 0.0.40
codegen_flags: <defaults>
</compile_context>

<pallas_src>
import functools

import jax
import jax.numpy as jnp
from jax.experimental import pallas as pl
from jax.experimental.pallas import tpu as pltpu


# ---------------------------------------------------------------------------
# Tile-size helper: largest `align`-aligned divisor of `dim` that is <= target,
# falling back to the full dim (full-extent blocks always satisfy TPU layout rules).
# ---------------------------------------------------------------------------
def _pick_tile(dim, target, align):
    if dim <= target:
        return dim
    for t in range(target, align - 1, -1):
        if dim % t == 0 and t % align == 0:
            return t
    return dim


# ---------------------------------------------------------------------------
# Fused (optional LayerNorm) + multi-output projection kernel.
#   x -> [LN(x)] -> (x @ W_t + b_t) for t in range(n_out)
# Used for: LN1 + Wq/Wk/Wv (self-attn), LN2 + Wq (context-attn), Wk/Wv on graph_embed.
# One pass over x per row-tile; weights are grid-invariant (stay resident in VMEM).
# ---------------------------------------------------------------------------
def _ln_multi_mm_kernel(*refs, n_out, apply_ln, eps):
    i = 0
    x_ref = refs[i]; i += 1
    if apply_ln:
        g_ref, bln_ref = refs[i], refs[i + 1]; i += 2
    wb_refs = refs[i:i + 2 * n_out]; i += 2 * n_out
    out_refs = refs[i:i + n_out]

    x = x_ref[...]
    if apply_ln:
        xf = x.astype(jnp.float32)
        mean = jnp.mean(xf, axis=-1, keepdims=True)
        var = jnp.mean(jnp.square(xf - mean), axis=-1, keepdims=True)
        xn = (xf - mean) * jax.lax.rsqrt(var + eps)
        x = (xn * g_ref[...] + bln_ref[...]).astype(x_ref.dtype)

    for t in range(n_out):
        w_ref, b_ref = wb_refs[2 * t], wb_refs[2 * t + 1]
        y = jnp.dot(x, w_ref[...], preferred_element_type=jnp.float32) + b_ref[...]
        out_refs[t][...] = y.astype(out_refs[t].dtype)


def fused_multi_matmul(x2, weights, biases, ln=None, tm_target=256):
    M, K = x2.shape
    tm = _pick_tile(M, tm_target, 8)
    apply_ln = ln is not None
    n_out = len(weights)

    args = [x2]
    in_specs = [pl.BlockSpec((tm, K), lambda i: (i, 0))]
    if apply_ln:
        gamma, beta = ln
        args += [gamma.reshape(1, K), beta.reshape(1, K)]
        in_specs += [pl.BlockSpec((1, K), lambda i: (0, 0)),
                     pl.BlockSpec((1, K), lambda i: (0, 0))]

    out_specs, out_shapes = [], []
    for w, b in zip(weights, biases):
        N = w.shape[1]
        args += [w, b.reshape(1, N)]
        in_specs += [pl.BlockSpec((K, N), lambda i: (0, 0)),
                     pl.BlockSpec((1, N), lambda i: (0, 0))]
        out_specs.append(pl.BlockSpec((tm, N), lambda i: (i, 0)))
        out_shapes.append(jax.ShapeDtypeStruct((M, N), x2.dtype))

    outs = pl.pallas_call(
        functools.partial(_ln_multi_mm_kernel, n_out=n_out, apply_ln=apply_ln, eps=1e-6),
        grid=(M // tm,),
        in_specs=in_specs,
        out_specs=tuple(out_specs),
        out_shape=tuple(out_shapes),
        compiler_params=pltpu.CompilerParams(dimension_semantics=("parallel",)),
    )(*args)
    return outs


# ---------------------------------------------------------------------------
# Tiled linear: y = act(x @ W + b) [+ residual]
# grid = (M/tm, N/tn, K/tk), f32 accumulator in VMEM scratch, init/flush via pl.when.
# ---------------------------------------------------------------------------
def _linear_kernel(*refs, has_res, activation):
    if has_res:
        x_ref, w_ref, b_ref, r_ref, o_ref, acc_ref = refs
    else:
        x_ref, w_ref, b_ref, o_ref, acc_ref = refs
    k = pl.program_id(2)

    @pl.when(k == 0)
    def _():
        acc_ref[...] = jnp.zeros_like(acc_ref)

    acc_ref[...] += jnp.dot(x_ref[...], w_ref[...], preferred_element_type=jnp.float32)

    @pl.when(k == pl.num_programs(2) - 1)
    def _():
        y = acc_ref[...] + b_ref[...].astype(jnp.float32)
        if activation == "relu":
            y = jnp.maximum(y, 0.0)
        if has_res:
            y = y + r_ref[...].astype(jnp.float32)
        o_ref[...] = y.astype(o_ref.dtype)


def linear(x2, w, b, residual=None, activation=None,
           tm_target=256, tn_target=512, tk_target=512):
    M, K = x2.shape
    N = w.shape[1]
    tm = _pick_tile(M, tm_target, 8)
    tn = _pick_tile(N, tn_target, 128)
    tk = _pick_tile(K, tk_target, 128)
    has_res = residual is not None

    args = [x2, w, b.reshape(1, N)]
    in_specs = [pl.BlockSpec((tm, tk), lambda i, j, kk: (i, kk)),
                pl.BlockSpec((tk, tn), lambda i, j, kk: (kk, j)),
                pl.BlockSpec((1, tn), lambda i, j, kk: (0, j))]
    if has_res:
        args.append(residual)
        in_specs.append(pl.BlockSpec((tm, tn), lambda i, j, kk: (i, j)))

    return pl.pallas_call(
        functools.partial(_linear_kernel, has_res=has_res, activation=activation),
        grid=(M // tm, N // tn, K // tk),
        in_specs=in_specs,
        out_specs=pl.BlockSpec((tm, tn), lambda i, j, kk: (i, j)),
        out_shape=jax.ShapeDtypeStruct((M, N), x2.dtype),
        scratch_shapes=[pltpu.VMEM((tm, tn), jnp.float32)],
        compiler_params=pltpu.CompilerParams(
            dimension_semantics=("parallel", "parallel", "arbitrary")),
    )(*args)


# ---------------------------------------------------------------------------
# Fused PositionwiseFeedForward:  out = W2(relu(W1(LN(x)) + b1)) + b2 + x
# grid = (M/tm, d_ff/tf): the [tm, d_ff] hidden never leaves VMEM; LN computed once
# per row-tile into scratch, W2 partial products accumulated in f32 scratch.
# ---------------------------------------------------------------------------
def _ffn_kernel(x_ref, g_ref, bln_ref, w1_ref, b1_ref, w2_ref, b2_ref, o_ref,
                xn_ref, acc_ref, *, eps):
    f = pl.program_id(1)

    @pl.when(f == 0)
    def _():
        x = x_ref[...].astype(jnp.float32)
        mean = jnp.mean(x, axis=-1, keepdims=True)
        var = jnp.mean(jnp.square(x - mean), axis=-1, keepdims=True)
        xn = (x - mean) * jax.lax.rsqrt(var + eps)
        xn_ref[...] = (xn * g_ref[...] + bln_ref[...]).astype(xn_ref.dtype)
        acc_ref[...] = jnp.zeros_like(acc_ref)

    h = jnp.dot(xn_ref[...], w1_ref[...], preferred_element_type=jnp.float32) + b1_ref[...]
    h = jnp.maximum(h, 0.0)
    acc_ref[...] += jnp.dot(h.astype(w2_ref.dtype), w2_ref[...],
                            preferred_element_type=jnp.float32)

    @pl.when(f == pl.num_programs(1) - 1)
    def _():
        o_ref[...] = (acc_ref[...] + b2_ref[...].astype(jnp.float32)
                      + x_ref[...].astype(jnp.float32)).astype(o_ref.dtype)


def ffn(x2, ln_g, ln_b, w1, b1, w2, b2, tm_target=256, tf_target=512):
    M, D = x2.shape
    F = w1.shape[1]
    tm = _pick_tile(M, tm_target, 8)
    tf = _pick_tile(F, tf_target, 128)
    return pl.pallas_call(
        functools.partial(_ffn_kernel, eps=1e-6),
        grid=(M // tm, F // tf),
        in_specs=[pl.BlockSpec((tm, D), lambda i, f: (i, 0)),
                  pl.BlockSpec((1, D), lambda i, f: (0, 0)),
                  pl.BlockSpec((1, D), lambda i, f: (0, 0)),
                  pl.BlockSpec((D, tf), lambda i, f: (0, f)),
                  pl.BlockSpec((1, tf), lambda i, f: (0, f)),
                  pl.BlockSpec((tf, D), lambda i, f: (f, 0)),
                  pl.BlockSpec((1, D), lambda i, f: (0, 0))],
        out_specs=pl.BlockSpec((tm, D), lambda i, f: (i, 0)),
        out_shape=jax.ShapeDtypeStruct((M, D), x2.dtype),
        scratch_shapes=[pltpu.VMEM((tm, D), x2.dtype),
                        pltpu.VMEM((tm, D), jnp.float32)],
        compiler_params=pltpu.CompilerParams(
            dimension_semantics=("parallel", "arbitrary")),
    )(x2, ln_g.reshape(1, D), ln_b.reshape(1, D), w1, b1.reshape(1, F),
      w2, b2.reshape(1, D))


# ---------------------------------------------------------------------------
# Multi-head attention cores.  One batch element per grid step, ALL heads inside
# (unrolled static loop), lane-dense (S, D) context output written directly in the
# layout the Wo projection consumes (no XLA transposes between kernels).
# Self-attention: key-padding mask (1.0 = masked), NO attention-prob output.
# Context attention: no mask, attention probs returned (module output).
# ---------------------------------------------------------------------------
def _mha_self_kernel(q_ref, k_ref, v_ref, m_ref, o_ref, *, heads, scale):
    D = q_ref.shape[2]
    dh = D // heads
    q, k, v = q_ref[0], k_ref[0], v_ref[0]
    masked = m_ref[0] > 0.5                      # (1, Sk), broadcasts over (Sq, Sk)
    ctxs = []
    for h in range(heads):
        sl = slice(h * dh, (h + 1) * dh)
        s = jax.lax.dot_general(q[:, sl], k[:, sl], (((1,), (1,)), ((), ())),
                                preferred_element_type=jnp.float32) * scale
        s = jnp.where(masked, jnp.float32(-1e18), s)   # masking kept in f32
        mx = jnp.max(s, axis=-1, keepdims=True)
        p = jnp.exp(s - mx)
        p = p * pl.reciprocal(jnp.sum(p, axis=-1, keepdims=True), approx=True)
        ctxs.append(jnp.dot(p.astype(v.dtype), v[:, sl],
                            preferred_element_type=jnp.float32))
    o_ref[0] = jnp.concatenate(ctxs, axis=-1).astype(o_ref.dtype)


def _mha_ctx_kernel(q_ref, k_ref, v_ref, o_ref, a_ref, *, heads, scale):
    D = q_ref.shape[2]
    dh = D // heads
    q, k, v = q_ref[0], k_ref[0], v_ref[0]
    ctxs = []
    for h in range(heads):
        sl = slice(h * dh, (h + 1) * dh)
        s = jax.lax.dot_general(q[:, sl], k[:, sl], (((1,), (1,)), ((), ())),
                                preferred_element_type=jnp.float32) * scale
        mx = jnp.max(s, axis=-1, keepdims=True)
        p = jnp.exp(s - mx)
        p = p * pl.reciprocal(jnp.sum(p, axis=-1, keepdims=True), approx=True)
        a_ref[0, h] = p.astype(a_ref.dtype)
        ctxs.append(jnp.dot(p.astype(v.dtype), v[:, sl],
                            preferred_element_type=jnp.float32))
    o_ref[0] = jnp.concatenate(ctxs, axis=-1).astype(o_ref.dtype)


def mha_self(q, k, v, mask, heads):
    B, S, D = q.shape
    scale = 1.0 / float(D // heads) ** 0.5
    return pl.pallas_call(
        functools.partial(_mha_self_kernel, heads=heads, scale=scale),
        grid=(B,),
        in_specs=[pl.BlockSpec((1, S, D), lambda b: (b, 0, 0)),
                  pl.BlockSpec((1, S, D), lambda b: (b, 0, 0)),
                  pl.BlockSpec((1, S, D), lambda b: (b, 0, 0)),
                  pl.BlockSpec((1, 1, S), lambda b: (b, 0, 0))],
        out_specs=pl.BlockSpec((1, S, D), lambda b: (b, 0, 0)),
        out_shape=jax.ShapeDtypeStruct((B, S, D), q.dtype),
        compiler_params=pltpu.CompilerParams(dimension_semantics=("parallel",)),
    )(q, k, v, mask)


def mha_context(q, k, v, heads):
    B, Sq, D = q.shape
    Sk = k.shape[1]
    scale = 1.0 / float(D // heads) ** 0.5
    ctx, attn = pl.pallas_call(
        functools.partial(_mha_ctx_kernel, heads=heads, scale=scale),
        grid=(B,),
        in_specs=[pl.BlockSpec((1, Sq, D), lambda b: (b, 0, 0)),
                  pl.BlockSpec((1, Sk, D), lambda b: (b, 0, 0)),
                  pl.BlockSpec((1, Sk, D), lambda b: (b, 0, 0))],
        out_specs=(pl.BlockSpec((1, Sq, D), lambda b: (b, 0, 0)),
                   pl.BlockSpec((1, heads, Sq, Sk), lambda b: (b, 0, 0, 0))),
        out_shape=(jax.ShapeDtypeStruct((B, Sq, D), q.dtype),
                   jax.ShapeDtypeStruct((B, heads, Sq, Sk), q.dtype)),
        compiler_params=pltpu.CompilerParams(dimension_semantics=("parallel",)),
    )(q, k, v)
    return ctx, attn


# ---------------------------------------------------------------------------
# Full TransformerEncoderLayer forward
# ---------------------------------------------------------------------------
def transformer_encoder_layer(p, inputs, mask, edge_feature, pair_indices,
                              graph_embed, heads):
    B, S, D = inputs.shape
    x2 = inputs.reshape(B * S, D)           # free (no-transpose) reshape

    # Fused LN1 + Q/K/V projections (single pass over the activations).
    q, k, v = fused_multi_matmul(
        x2, [p["sa_wq"], p["sa_wk"], p["sa_wv"]],
        [p["sa_bq"], p["sa_bk"], p["sa_bv"]],
        ln=(p["ln1_g"], p["ln1_b"]))

    # Self-attention: all heads per batch element, masked, no attn-prob output.
    # TODO(synk): the external `attn` module is edge-feature aware; that part is not
    # defined in the reference source, so standard MHA is used and no
    # edge_feature_updated is produced.
    ctx = mha_self(q.reshape(B, S, D), k.reshape(B, S, D), v.reshape(B, S, D),
                   mask, heads)

    # query = dropout(context) + inputs     (dropout = identity, eval mode)
    query = linear(ctx.reshape(B * S, D), p["sa_wo"], p["sa_bo"], residual=x2)

    if graph_embed is not None:
        _, Sg, _ = graph_embed.shape
        g2 = graph_embed.reshape(B * Sg, D)
        # Fused LN2 + Wq for the context-attention query.
        (q_ca,) = fused_multi_matmul(query, [p["ca_wq"]], [p["ca_bq"]],
                                     ln=(p["ln2_g"], p["ln2_b"]))
        # K/V projections of graph_embed share one pass (no LN).
        k_ca, v_ca = fused_multi_matmul(g2, [p["ca_wk"], p["ca_wv"]],
                                        [p["ca_bk"], p["ca_bv"]], ln=None)
        mid, context_attn = mha_context(q_ca.reshape(B, S, D),
                                        k_ca.reshape(B, Sg, D),
                                        v_ca.reshape(B, Sg, D), heads)
        out = linear(mid.reshape(B * S, D), p["ca_wo"], p["ca_bo"], residual=query)
    else:
        out = query
        context_attn = None

    if edge_feature is not None:
        # TODO(synk): edge_feature path needs edge_feature_updated from the
        # (unspecified) edge-aware attention module; left unimplemented.
        pass

    # Fused PositionwiseFeedForward: LN -> W1 -> ReLU -> W2 -> + residual.
    ff_out = ffn(out, p["ff_ln_g"], p["ff_ln_b"], p["ff_w1"], p["ff_b1"],
                 p["ff_w2"], p["ff_b2"])

    return ff_out.reshape(B, S, D), context_attn, edge_feature


# ---------------------------------------------------------------------------
# Deterministic parameter init
# ---------------------------------------------------------------------------
def init_params(key, d_model, d_ff):
    p = {}
    names = ["sa_wq", "sa_wk", "sa_wv", "sa_wo", "ca_wq", "ca_wk", "ca_wv", "ca_wo"]
    keys = jax.random.split(key, len(names) + 2)
    for i, n in enumerate(names):
        p[n] = jax.random.normal(keys[i], (d_model, d_model), jnp.float32) * 0.02
        p[n.replace("w", "b")] = jnp.zeros((d_model,), jnp.float32)
    p["ff_w1"] = jax.random.normal(keys[-2], (d_model, d_ff), jnp.float32) * 0.02
    p["ff_b1"] = jnp.zeros((d_ff,), jnp.float32)
    p["ff_w2"] = jax.random.normal(keys[-1], (d_ff, d_model), jnp.float32) * 0.02
    p["ff_b2"] = jnp.zeros((d_model,), jnp.float32)
    for ln in ["ln1", "ln2", "ff_ln"]:
        p[ln + "_g"] = jnp.ones((d_model,), jnp.float32)
        p[ln + "_b"] = jnp.zeros((d_model,), jnp.float32)
    return p


if __name__ == "__main__":
    key = jax.random.PRNGKey(0)
    B, S, D, H, d_ff, Sg = 2, 8, 32, 4, 64, 4
    kp, kx, kg = jax.random.split(key, 3)

    params = init_params(kp, D, d_ff)
    inputs = jax.random.normal(kx, (B, S, D), jnp.float32)
    graph_embed = jax.random.normal(kg, (B, Sg, D), jnp.float32)
    # key-padding mask [B, 1, S]; 1.0 marks a masked (padded) key position
    mask = jnp.zeros((B, 1, S), jnp.float32).at[1, 0, S - 2:].set(1.0)

    fwd = jax.jit(lambda p_, x_, m_, g_: transformer_encoder_layer(
        p_, x_, m_, None, None, g_, H))
    out, context_attn, edge_feature = fwd(params, inputs, mask, graph_embed)

    jax.block_until_ready(out)
    jax.block_until_ready(context_attn)
    assert out.shape == (B, S, D)
    assert context_attn.shape == (B, H, S, Sg)
    print("KERNEL_OK")
</pallas_src>

<mosaic_0001>
module attributes {stable_mosaic.version = 11 : i64} {
  func.func @_ln_multi_mm_kernel(%arg0: i32, %arg1: memref<8x32xf32, #tpu.memory_space<vmem>>, %arg2: memref<32x32xf32, #tpu.memory_space<vmem>>, %arg3: memref<1x32xf32, #tpu.memory_space<vmem>>, %arg4: memref<32x32xf32, #tpu.memory_space<vmem>>, %arg5: memref<1x32xf32, #tpu.memory_space<vmem>>, %arg6: memref<8x32xf32, #tpu.memory_space<vmem>>, %arg7: memref<8x32xf32, #tpu.memory_space<vmem>>) attributes {dimension_semantics = [#tpu.dimension_semantics<parallel>], iteration_bounds = array<i64: 1>, scalar_prefetch = 0 : i64, scratch_operands = 0 : i64, tpu.core_type = #tpu.core_type<tc>, window_params = [{transform_indices = @transform_0, window_bounds = array<i64: 8, 32>}, {pipeline_mode = #tpu.pipeline_mode<synchronous>, transform_indices = @transform_1, window_bounds = array<i64: 32, 32>}, {pipeline_mode = #tpu.pipeline_mode<synchronous>, transform_indices = @transform_2, window_bounds = array<i64: 1, 32>}, {pipeline_mode = #tpu.pipeline_mode<synchronous>, transform_indices = @transform_3, window_bounds = array<i64: 32, 32>}, {pipeline_mode = #tpu.pipeline_mode<synchronous>, transform_indices = @transform_4, window_bounds = array<i64: 1, 32>}, {transform_indices = @transform_5, window_bounds = array<i64: 8, 32>}, {transform_indices = @transform_6, window_bounds = array<i64: 8, 32>}]} {
    %c0 = arith.constant 0 : index
    %c0_0 = arith.constant 0 : index
    %0 = vector.load %arg1[%c0, %c0_0] : memref<8x32xf32, #tpu.memory_space<vmem>>, vector<8x32xf32>
    %c0_1 = arith.constant 0 : index
    %c0_2 = arith.constant 0 : index
    %1 = vector.load %arg2[%c0_1, %c0_2] : memref<32x32xf32, #tpu.memory_space<vmem>>, vector<32x32xf32>
    %cst = arith.constant dense<0.000000e+00> : vector<8x32xf32>
    %2 = tpu.matmul %0, %1, %cst {dimension_numbers = #tpu.dot_dimension_numbers<[1], [0], [0], [1], [0, 0, 1, 1], [], []>} : vector<8x32xf32>, vector<32x32xf32>, vector<8x32xf32> -> vector<8x32xf32>
    %c0_3 = arith.constant 0 : index
    %c0_4 = arith.constant 0 : index
    %3 = vector.load %arg3[%c0_3, %c0_4] : memref<1x32xf32, #tpu.memory_space<vmem>>, vector<1x32xf32>
    %4 = vector.broadcast %3 : vector<1x32xf32> to vector<8x32xf32>
    %5 = arith.addf %2, %4 : vector<8x32xf32>
    %c0_5 = arith.constant 0 : index
    %c0_6 = arith.constant 0 : index
    %6 = vector.load %arg6[%c0_5, %c0_6] : memref<8x32xf32, #tpu.memory_space<vmem>>, vector<8x32xf32>
    tpu.vector_store %arg6[%c0_5, %c0_6], %5 {strides = array<i32>} : memref<8x32xf32, #tpu.memory_space<vmem>>, vector<8x32xf32>,
    %c0_7 = arith.constant 0 : index
    %c0_8 = arith.constant 0 : index
    %7 = vector.load %arg4[%c0_7, %c0_8] : memref<32x32xf32, #tpu.memory_space<vmem>>, vector<32x32xf32>
    %cst_9 = arith.constant dense<0.000000e+00> : vector<8x32xf32>
    %8 = tpu.matmul %0, %7, %cst_9 {dimension_numbers = #tpu.dot_dimension_numbers<[1], [0], [0], [1], [0, 0, 1, 1], [], []>} : vector<8x32xf32>, vector<32x32xf32>, vector<8x32xf32> -> vector<8x32xf32>
    %c0_10 = arith.constant 0 : index
    %c0_11 = arith.constant 0 : index
    %9 = vector.load %arg5[%c0_10, %c0_11] : memref<1x32xf32, #tpu.memory_space<vmem>>, vector<1x32xf32>
    %10 = vector.broadcast %9 : vector<1x32xf32> to vector<8x32xf32>
    %11 = arith.addf %8, %10 : vector<8x32xf32>
    %c0_12 = arith.constant 0 : index
    %c0_13 = arith.constant 0 : index
    %12 = vector.load %arg7[%c0_12, %c0_13] : memref<8x32xf32, #tpu.memory_space<vmem>>, vector<8x32xf32>
    tpu.vector_store %arg7[%c0_12, %c0_13], %11 {strides = array<i32>} : memref<8x32xf32, #tpu.memory_space<vmem>>, vector<8x32xf32>,
    return
  }
  func.func @transform_0(%arg0: i32) -> (i32, i32) {
    %c0_i32 = arith.constant 0 : i32
    %c0_i32_0 = arith.constant 0 : i32
    return %arg0, %c0_i32 : i32, i32
  }
  func.func @transform_1(%arg0: i32) -> (i32, i32) {
    %c0_i32 = arith.constant 0 : i32
    %c0_i32_0 = arith.constant 0 : i32
    %c0_i32_1 = arith.constant 0 : i32
    return %c0_i32, %c0_i32_0 : i32, i32
  }
  func.func @transform_2(%arg0: i32) -> (i32, i32) {
    %c0_i32 = arith.constant 0 : i32
    %c0_i32_0 = arith.constant 0 : i32
    %c0_i32_1 = arith.constant 0 : i32
    return %c0_i32, %c0_i32_0 : i32, i32
  }
  func.func @transform_3(%arg0: i32) -> (i32, i32) {
    %c0_i32 = arith.constant 0 : i32
    %c0_i32_0 = arith.constant 0 : i32
    %c0_i32_1 = arith.constant 0 : i32
    return %c0_i32, %c0_i32_0 : i32, i32
  }
  func.func @transform_4(%arg0: i32) -> (i32, i32) {
    %c0_i32 = arith.constant 0 : i32
    %c0_i32_0 = arith.constant 0 : i32
    %c0_i32_1 = arith.constant 0 : i32
    return %c0_i32, %c0_i32_0 : i32, i32
  }
  func.func @transform_5(%arg0: i32) -> (i32, i32) {
    %c0_i32 = arith.constant 0 : i32
    %c0_i32_0 = arith.constant 0 : i32
    return %arg0, %c0_i32 : i32, i32
  }
  func.func @transform_6(%arg0: i32) -> (i32, i32) {
    %c0_i32 = arith.constant 0 : i32
    %c0_i32_0 = arith.constant 0 : i32
    return %arg0, %c0_i32 : i32, i32
  }
}

module attributes {stable_mosaic.version = 11 : i64} {
  func.func @_linear_kernel(%arg0: i32, %arg1: i32, %arg2: i32, %arg3: memref<16x32xf32, #tpu.memory_space<vmem>>, %arg4: memref<32x32xf32, #tpu.memory_space<vmem>>, %arg5: memref<1x32xf32, #tpu.memory_space<vmem>>, %arg6: memref<16x32xf32, #tpu.memory_space<vmem>>, %arg7: memref<16x32xf32, #tpu.memory_space<vmem>>, %arg8: memref<16x32xf32, #tpu.memory_space<vmem>>) attributes {dimension_semantics = [#tpu.dimension_semantics<parallel>, #tpu.dimension_semantics<parallel>, #tpu.dimension_semantics<arbitrary>], iteration_bounds = array<i64: 1, 1, 1>, scalar_prefetch = 0 : i64, scratch_operands = 1 : i64, tpu.core_type = #tpu.core_type<tc>, window_params = [{transform_indices = @transform_0, window_bounds = array<i64: 16, 32>}, {transform_indices = @transform_1, window_bounds = array<i64: 32, 32>}, {transform_indices = @transform_2, window_bounds = array<i64: 1, 32>}, {transform_indices = @transform_3, window_bounds = array<i64: 16, 32>}, {transform_indices = @transform_4, window_bounds = array<i64: 16, 32>}]} {
    %c0_i32 = arith.constant 0 : i32
    %0 = arith.cmpi eq, %arg2, %c0_i32 : i32
    %1 = arith.extui %0 : i1 to i32
    %c0_i32_0 = arith.constant 0 : i32
    %2 = arith.cmpi ne, %1, %c0_i32_0 : i32
    scf.if %2 {
      %cst_10 = arith.constant 0.000000e+00 : f32
      %12 = vector.broadcast %cst_10 : f32 to vector<16x32xf32>
      %c0_11 = arith.constant 0 : index
      %c0_12 = arith.constant 0 : index
      %13 = vector.load %arg8[%c0_11, %c0_12] : memref<16x32xf32, #tpu.memory_space<vmem>>, vector<16x32xf32>
      tpu.vector_store %arg8[%c0_11, %c0_12], %12 {strides = array<i32>} : memref<16x32xf32, #tpu.memory_space<vmem>>, vector<16x32xf32>,
    } else {
    }
    %c0 = arith.constant 0 : index
    %c0_1 = arith.constant 0 : index
    %3 = vector.load %arg8[%c0, %c0_1] : memref<16x32xf32, #tpu.memory_space<vmem>>, vector<16x32xf32>
    %c0_2 = arith.constant 0 : index
    %c0_3 = arith.constant 0 : index
    %4 = vector.load %arg3[%c0_2, %c0_3] : memref<16x32xf32, #tpu.memory_space<vmem>>, vector<16x32xf32>
    %c0_4 = arith.constant 0 : index
    %c0_5 = arith.constant 0 : index
    %5 = vector.load %arg4[%c0_4, %c0_5] : memref<32x32xf32, #tpu.memory_space<vmem>>, vector<32x32xf32>
    %cst = arith.constant dense<0.000000e+00> : vector<16x32xf32>
    %6 = tpu.matmul %4, %5, %cst {dimension_numbers = #tpu.dot_dimension_numbers<[1], [0], [0], [1], [0, 0, 1, 1], [], []>} : vector<16x32xf32>, vector<32x32xf32>, vector<16x32xf32> -> vector<16x32xf32>
    %7 = arith.addf %3, %6 : vector<16x32xf32>
    %c0_6 = arith.constant 0 : index
    %c0_7 = arith.constant 0 : index
    %8 = vector.load %arg8[%c0_6, %c0_7] : memref<16x32xf32, #tpu.memory_space<vmem>>, vector<16x32xf32>
    tpu.vector_store %arg8[%c0_6, %c0_7], %7 {strides = array<i32>} : memref<16x32xf32, #tpu.memory_space<vmem>>, vector<16x32xf32>,
    %c0_i32_8 = arith.constant 0 : i32
    %9 = arith.cmpi eq, %arg2, %c0_i32_8 : i32
    %10 = arith.extui %9 : i1 to i32
    %c0_i32_9 = arith.constant 0 : i32
    %11 = arith.cmpi ne, %10, %c0_i32_9 : i32
    scf.if %11 {
      %c0_10 = arith.constant 0 : index
      %c0_11 = arith.constant 0 : index
      %12 = vector.load %arg8[%c0_10, %c0_11] : memref<16x32xf32, #tpu.memory_space<vmem>>, vector<16x32xf32>
      %c0_12 = arith.constant 0 : index
      %c0_13 = arith.constant 0 : index
      %13 = vector.load %arg5[%c0_12, %c0_13] : memref<1x32xf32, #tpu.memory_space<vmem>>, vector<1x32xf32>
      %14 = vector.broadcast %13 : vector<1x32xf32> to vector<16x32xf32>
      %15 = arith.addf %12, %14 : vector<16x32xf32>
      %c0_14 = arith.constant 0 : index
      %c0_15 = arith.constant 0 : index
      %16 = vector.load %arg6[%c0_14, %c0_15] : memref<16x32xf32, #tpu.memory_space<vmem>>, vector<16x32xf32>
      %17 = arith.addf %15, %16 : vector<16x32xf32>
      %c0_16 = arith.constant 0 : index
      %c0_17 = arith.constant 0 : index
      %18 = vector.load %arg7[%c0_16, %c0_17] : memref<16x32xf32, #tpu.memory_space<vmem>>, vector<16x32xf32>
      tpu.vector_store %arg7[%c0_16, %c0_17], %17 {strides = array<i32>} : memref<16x32xf32, #tpu.memory_space<vmem>>, vector<16x32xf32>,
    } else {
    }
    return
  }
  func.func @transform_0(%arg0: i32, %arg1: i32, %arg2: i32) -> (i32, i32) {
    %c0_i32 = arith.constant 0 : i32
    return %arg0, %arg2 : i32, i32
  }
  func.func @transform_1(%arg0: i32, %arg1: i32, %arg2: i32) -> (i32, i32) {
    %c0_i32 = arith.constant 0 : i32
    return %arg2, %arg1 : i32, i32
  }
  func.func @transform_2(%arg0: i32, %arg1: i32, %arg2: i32) -> (i32, i32) {
    %c0_i32 = arith.constant 0 : i32
    %c0_i32_0 = arith.constant 0 : i32
    return %c0_i32, %arg1 : i32, i32
  }
  func.func @transform_3(%arg0: i32, %arg1: i32, %arg2: i32) -> (i32, i32) {
    %c0_i32 = arith.constant 0 : i32
    return %arg0, %arg1 : i32, i32
  }
  func.func @transform_4(%arg0: i32, %arg1: i32, %arg2: i32) -> (i32, i32) {
    %c0_i32 = arith.constant 0 : i32
    return %arg0, %arg1 : i32, i32
  }
}

module attributes {stable_mosaic.version = 11 : i64} {
  func.func @_mha_self_kernel(%arg0: i32, %arg1: memref<1x8x32xf32, #tpu.memory_space<vmem>>, %arg2: memref<1x8x32xf32, #tpu.memory_space<vmem>>, %arg3: memref<1x8x32xf32, #tpu.memory_space<vmem>>, %arg4: memref<1x1x8xf32, #tpu.memory_space<vmem>>, %arg5: memref<1x8x32xf32, #tpu.memory_space<vmem>>) attributes {dimension_semantics = [#tpu.dimension_semantics<parallel>], iteration_bounds = array<i64: 2>, scalar_prefetch = 0 : i64, scratch_operands = 0 : i64, tpu.core_type = #tpu.core_type<tc>, window_params = [{transform_indices = @transform_0, window_bounds = array<i64: 1, 8, 32>}, {transform_indices = @transform_1, window_bounds = array<i64: 1, 8, 32>}, {transform_indices = @transform_2, window_bounds = array<i64: 1, 8, 32>}, {transform_indices = @transform_3, window_bounds = array<i64: 1, 1, 8>}, {transform_indices = @transform_4, window_bounds = array<i64: 1, 8, 32>}]} {
    %c0 = arith.constant 0 : index
    %c0_0 = arith.constant 0 : index
    %c0_1 = arith.constant 0 : index
    %0 = vector.load %arg1[%c0, %c0_0, %c0_1] : memref<1x8x32xf32, #tpu.memory_space<vmem>>, vector<1x8x32xf32>
    %1 = vector.shape_cast %0 : vector<1x8x32xf32> to vector<8x32xf32>
    %c0_2 = arith.constant 0 : index
    %c0_3 = arith.constant 0 : index
    %c0_4 = arith.constant 0 : index
    %2 = vector.load %arg2[%c0_2, %c0_3, %c0_4] : memref<1x8x32xf32, #tpu.memory_space<vmem>>, vector<1x8x32xf32>
    %3 = vector.shape_cast %2 : vector<1x8x32xf32> to vector<8x32xf32>
    %c0_5 = arith.constant 0 : index
    %c0_6 = arith.constant 0 : index
    %c0_7 = arith.constant 0 : index
    %4 = vector.load %arg3[%c0_5, %c0_6, %c0_7] : memref<1x8x32xf32, #tpu.memory_space<vmem>>, vector<1x8x32xf32>
    %5 = vector.shape_cast %4 : vector<1x8x32xf32> to vector<8x32xf32>
    %c0_8 = arith.constant 0 : index
    %c0_9 = arith.constant 0 : index
    %c0_10 = arith.constant 0 : index
    %6 = vector.load %arg4[%c0_8, %c0_9, %c0_10] : memref<1x1x8xf32, #tpu.memory_space<vmem>>, vector<1x1x8xf32>
    %7 = vector.shape_cast %6 : vector<1x1x8xf32> to vector<1x8xf32>
    %cst = arith.constant 5.000000e-01 : f32
    %8 = vector.broadcast %cst : f32 to vector<1x8xf32>
    %9 = arith.cmpf ogt, %7, %8 : vector<1x8xf32>
    %10 = vector.extract_strided_slice %1 {offsets = [0, 0], sizes = [8, 8], strides = [1, 1]} : vector<8x32xf32> to vector<8x8xf32>
    %11 = vector.extract_strided_slice %3 {offsets = [0, 0], sizes = [8, 8], strides = [1, 1]} : vector<8x32xf32> to vector<8x8xf32>
    %cst_11 = arith.constant dense<0.000000e+00> : vector<8x8xf32>
    %12 = tpu.matmul %10, %11, %cst_11 {dimension_numbers = #tpu.dot_dimension_numbers<[1], [1], [0], [0], [0, 0, 1, 0], [], []>} : vector<8x8xf32>, vector<8x8xf32>, vector<8x8xf32> -> vector<8x8xf32>
    %cst_12 = arith.constant 0.353553385 : f32
    %13 = vector.broadcast %cst_12 : f32 to vector<8x8xf32>
    %14 = arith.mulf %12, %13 : vector<8x8xf32>
    %cst_13 = arith.constant -9.99999984E+17 : f32
    %15 = vector.shape_cast %9 : vector<1x8xi1> to vector<1x8xi1>
    %16 = vector.broadcast %15 : vector<1x8xi1> to vector<8x8xi1>
    %17 = vector.broadcast %cst_13 : f32 to vector<8x8xf32>
    %18 = arith.select %16, %17, %14 : vector<8x8xi1>, vector<8x8xf32>
    %cst_14 = arith.constant dense<0xFF800000> : vector<8xf32>
    %19 = vector.multi_reduction <maximumf>, %18, %cst_14 [1] : vector<8x8xf32> to vector<8xf32>
    %20 = vector.shape_cast %19 : vector<8xf32> to vector<8x1xf32>
    %21 = vector.broadcast %20 : vector<8x1xf32> to vector<8x8xf32>
    %22 = arith.subf %18, %21 : vector<8x8xf32>
    %23 = math.exp %22 : vector<8x8xf32>
    %cst_15 = arith.constant dense<0.000000e+00> : vector<8xf32>
    %24 = vector.multi_reduction <add>, %23, %cst_15 [1] : vector<8x8xf32> to vector<8xf32>
    %25 = vector.shape_cast %24 : vector<8xf32> to vector<8x1xf32>
    %26 = tpu.reciprocal %25 {approx = true} : vector<8x1xf32> -> vector<8x1xf32>
    %27 = vector.broadcast %26 : vector<8x1xf32> to vector<8x8xf32>
    %28 = arith.mulf %23, %27 : vector<8x8xf32>
    %29 = vector.extract_strided_slice %5 {offsets = [0, 0], sizes = [8, 8], strides = [1, 1]} : vector<8x32xf32> to vector<8x8xf32>
    %cst_16 = arith.constant dense<0.000000e+00> : vector<8x8xf32>
    %30 = tpu.matmul %28, %29, %cst_16 {dimension_numbers = #tpu.dot_dimension_numbers<[1], [0], [0], [1], [0, 0, 1, 1], [], []>} : vector<8x8xf32>, vector<8x8xf32>, vector<8x8xf32> -> vector<8x8xf32>
    %31 = vector.extract_strided_slice %1 {offsets = [0, 8], sizes = [8, 8], strides = [1, 1]} : vector<8x32xf32> to vector<8x8xf32>
    %32 = vector.extract_strided_slice %3 {offsets = [0, 8], sizes = [8, 8], strides = [1, 1]} : vector<8x32xf32> to vector<8x8xf32>
    %cst_17 = arith.constant dense<0.000000e+00> : vector<8x8xf32>
    %33 = tpu.matmul %31, %32, %cst_17 {dimension_numbers = #tpu.dot_dimension_numbers<[1], [1], [0], [0], [0, 0, 1, 0], [], []>} : vector<8x8xf32>, vector<8x8xf32>, vector<8x8xf32> -> vector<8x8xf32>
    %cst_18 = arith.constant 0.353553385 : f32
    %34 = vector.broadcast %cst_18 : f32 to vector<8x8xf32>
    %35 = arith.mulf %33, %34 : vector<8x8xf32>
    %cst_19 = arith.constant -9.99999984E+17 : f32
    %36 = vector.shape_cast %9 : vector<1x8xi1> to vector<1x8xi1>
    %37 = vector.broadcast %36 : vector<1x8xi1> to vector<8x8xi1>
    %38 = vector.broadcast %cst_19 : f32 to vector<8x8xf32>
    %39 = arith.select %37, %38, %35 : vector<8x8xi1>, vector<8x8xf32>
    %cst_20 = arith.constant dense<0xFF800000> : vector<8xf32>
    %40 = vector.multi_reduction <maximumf>, %39, %cst_20 [1] : vector<8x8xf32> to vector<8xf32>
    %41 = vector.shape_cast %40 : vector<8xf32> to vector<8x1xf32>
    %42 = vector.broadcast %41 : vector<8x1xf32> to vector<8x8xf32>
    %43 = arith.subf %39, %42 : vector<8x8xf32>
    %44 = math.exp %43 : vector<8x8xf32>
    %cst_21 = arith.constant dense<0.000000e+00> : vector<8xf32>
    %45 = vector.multi_reduction <add>, %44, %cst_21 [1] : vector<8x8xf32> to vector<8xf32>
    %46 = vector.shape_cast %45 : vector<8xf32> to vector<8x1xf32>
    %47 = tpu.reciprocal %46 {approx = true} : vector<8x1xf32> -> vector<8x1xf32>
    %48 = vector.broadcast %47 : vector<8x1xf32> to vector<8x8xf32>
    %49 = arith.mulf %44, %48 : vector<8x8xf32>
    %50 = vector.extract_strided_slice %5 {offsets = [0, 8], sizes = [8, 8], strides = [1, 1]} : vector<8x32xf32> to vector<8x8xf32>
    %cst_22 = arith.constant dense<0.000000e+00> : vector<8x8xf32>
    %51 = tpu.matmul %49, %50, %cst_22 {dimension_numbers = #tpu.dot_dimension_numbers<[1], [0], [0], [1], [0, 0, 1, 1], [], []>} : vector<8x8xf32>, vector<8x8xf32>, vector<8x8xf32> -> vector<8x8xf32>
    %52 = vector.extract_strided_slice %1 {offsets = [0, 16], sizes = [8, 8], strides = [1, 1]} : vector<8x32xf32> to vector<8x8xf32>
    %53 = vector.extract_strided_slice %3 {offsets = [0, 16], sizes = [8, 8], strides = [1, 1]} : vector<8x32xf32> to vector<8x8xf32>
    %cst_23 = arith.constant dense<0.000000e+00> : vector<8x8xf32>
    %54 = tpu.matmul %52, %53, %cst_23 {dimension_numbers = #tpu.dot_dimension_numbers<[1], [1], [0], [0], [0, 0, 1, 0], [], []>} : vector<8x8xf32>, vector<8x8xf32>, vector<8x8xf32> -> vector<8x8xf32>
    %cst_24 = arith.constant 0.353553385 : f32
    %55 = vector.broadcast %cst_24 : f32 to vector<8x8xf32>
    %56 = arith.mulf %54, %55 : vector<8x8xf32>
    %cst_25 = arith.constant -9.99999984E+17 : f32
    %57 = vector.shape_cast %9 : vector<1x8xi1> to vector<1x8xi1>
    %58 = vector.broadcast %57 : vector<1x8xi1> to vector<8x8xi1>
    %59 = vector.broadcast %cst_25 : f32 to vector<8x8xf32>
    %60 = arith.select %58, %59, %56 : vector<8x8xi1>, vector<8x8xf32>
    %cst_26 = arith.constant dense<0xFF800000> : vector<8xf32>
    %61 = vector.multi_reduction <maximumf>, %60, %cst_26 [1] : vector<8x8xf32> to vector<8xf32>
    %62 = vector.shape_cast %61 : vector<8xf32> to vector<8x1xf32>
    %63 = vector.broadcast %62 : vector<8x1xf32> to vector<8x8xf32>
    %64 = arith.subf %60, %63 : vector<8x8xf32>
    %65 = math.exp %64 : vector<8x8xf32>
    %cst_27 = arith.constant dense<0.000000e+00> : vector<8xf32>
    %66 = vector.multi_reduction <add>, %65, %cst_27 [1] : vector<8x8xf32> to vector<8xf32>
    %67 = vector.shape_cast %66 : vector<8xf32> to vector<8x1xf32>
    %68 = tpu.reciprocal %67 {approx = true} : vector<8x1xf32> -> vector<8x1xf32>
    %69 = vector.broadcast %68 : vector<8x1xf32> to vector<8x8xf32>
    %70 = arith.mulf %65, %69 : vector<8x8xf32>
    %71 = vector.extract_strided_slice %5 {offsets = [0, 16], sizes = [8, 8], strides = [1, 1]} : vector<8x32xf32> to vector<8x8xf32>
    %cst_28 = arith.constant dense<0.000000e+00> : vector<8x8xf32>
    %72 = tpu.matmul %70, %71, %cst_28 {dimension_numbers = #tpu.dot_dimension_numbers<[1], [0], [0], [1], [0, 0, 1, 1], [], []>} : vector<8x8xf32>, vector<8x8xf32>, vector<8x8xf32> -> vector<8x8xf32>
    %73 = vector.extract_strided_slice %1 {offsets = [0, 24], sizes = [8, 8], strides = [1, 1]} : vector<8x32xf32> to vector<8x8xf32>
    %74 = vector.extract_strided_slice %3 {offsets = [0, 24], sizes = [8, 8], strides = [1, 1]} : vector<8x32xf32> to vector<8x8xf32>
    %cst_29 = arith.constant dense<0.000000e+00> : vector<8x8xf32>
    %75 = tpu.matmul %73, %74, %cst_29 {dimension_numbers = #tpu.dot_dimension_numbers<[1], [1], [0], [0], [0, 0, 1, 0], [], []>} : vector<8x8xf32>, vector<8x8xf32>, vector<8x8xf32> -> vector<8x8xf32>
    %cst_30 = arith.constant 0.353553385 : f32
    %76 = vector.broadcast %cst_30 : f32 to vector<8x8xf32>
    %77 = arith.mulf %75, %76 : vector<8x8xf32>
    %cst_31 = arith.constant -9.99999984E+17 : f32
    %78 = vector.shape_cast %9 : vector<1x8xi1> to vector<1x8xi1>
    %79 = vector.broadcast %78 : vector<1x8xi1> to vector<8x8xi1>
    %80 = vector.broadcast %cst_31 : f32 to vector<8x8xf32>
    %81 = arith.select %79, %80, %77 : vector<8x8xi1>, vector<8x8xf32>
    %cst_32 = arith.constant dense<0xFF800000> : vector<8xf32>
    %82 = vector.multi_reduction <maximumf>, %81, %cst_32 [1] : vector<8x8xf32> to vector<8xf32>
    %83 = vector.shape_cast %82 : vector<8xf32> to vector<8x1xf32>
    %84 = vector.broadcast %83 : vector<8x1xf32> to vector<8x8xf32>
    %85 = arith.subf %81, %84 : vector<8x8xf32>
    %86 = math.exp %85 : vector<8x8xf32>
    %cst_33 = arith.constant dense<0.000000e+00> : vector<8xf32>
    %87 = vector.multi_reduction <add>, %86, %cst_33 [1] : vector<8x8xf32> to vector<8xf32>
    %88 = vector.shape_cast %87 : vector<8xf32> to vector<8x1xf32>
    %89 = tpu.reciprocal %88 {approx = true} : vector<8x1xf32> -> vector<8x1xf32>
    %90 = vector.broadcast %89 : vector<8x1xf32> to vector<8x8xf32>
    %91 = arith.mulf %86, %90 : vector<8x8xf32>
    %92 = vector.extract_strided_slice %5 {offsets = [0, 24], sizes = [8, 8], strides = [1, 1]} : vector<8x32xf32> to vector<8x8xf32>
    %cst_34 = arith.constant dense<0.000000e+00> : vector<8x8xf32>
    %93 = tpu.matmul %91, %92, %cst_34 {dimension_numbers = #tpu.dot_dimension_numbers<[1], [0], [0], [1], [0, 0, 1, 1], [], []>} : vector<8x8xf32>, vector<8x8xf32>, vector<8x8xf32> -> vector<8x8xf32>
    %94 = tpu.concatenate %30, %51, %72, %93 in 1 : vector<8x8xf32>, vector<8x8xf32>, vector<8x8xf32>, vector<8x8xf32> -> vector<8x32xf32>
    %c0_35 = arith.constant 0 : index
    %c0_36 = arith.constant 0 : index
    %c0_37 = arith.constant 0 : index
    %95 = vector.load %arg5[%c0_35, %c0_36, %c0_37] : memref<1x8x32xf32, #tpu.memory_space<vmem>>, vector<1x8x32xf32>
    %96 = vector.shape_cast %95 : vector<1x8x32xf32> to vector<8x32xf32>
    %97 = vector.shape_cast %94 : vector<8x32xf32> to vector<1x8x32xf32>
    tpu.vector_store %arg5[%c0_35, %c0_36, %c0_37], %97 {strides = array<i32>} : memref<1x8x32xf32, #tpu.memory_space<vmem>>, vector<1x8x32xf32>,
    return
  }
  func.func @transform_0(%arg0: i32) -> (i32, i32, i32) {
    %c0_i32 = arith.constant 0 : i32
    %c0_i32_0 = arith.constant 0 : i32
    %c0_i32_1 = arith.constant 0 : i32
    return %arg0, %c0_i32, %c0_i32_0 : i32, i32, i32
  }
  func.func @transform_1(%arg0: i32) -> (i32, i32, i32) {
    %c0_i32 = arith.constant 0 : i32
    %c0_i32_0 = arith.constant 0 : i32
    %c0_i32_1 = arith.constant 0 : i32
    return %arg0, %c0_i32, %c0_i32_0 : i32, i32, i32
  }
  func.func @transform_2(%arg0: i32) -> (i32, i32, i32) {
    %c0_i32 = arith.constant 0 : i32
    %c0_i32_0 = arith.constant 0 : i32
    %c0_i32_1 = arith.constant 0 : i32
    return %arg0, %c0_i32, %c0_i32_0 : i32, i32, i32
  }
  func.func @transform_3(%arg0: i32) -> (i32, i32, i32) {
    %c0_i32 = arith.constant 0 : i32
    %c0_i32_0 = arith.constant 0 : i32
    %c0_i32_1 = arith.constant 0 : i32
    return %arg0, %c0_i32, %c0_i32_0 : i32, i32, i32
  }
  func.func @transform_4(%arg0: i32) -> (i32, i32, i32) {
    %c0_i32 = arith.constant 0 : i32
    %c0_i32_0 = arith.constant 0 : i32
    %c0_i32_1 = arith.constant 0 : i32
    return %arg0, %c0_i32, %c0_i32_0 : i32, i32, i32
  }
}

module attributes {stable_mosaic.version = 11 : i64} {
  func.func @_ln_multi_mm_kernel(%arg0: i32, %arg1: memref<16x32xf32, #tpu.memory_space<vmem>>, %arg2: memref<1x32xf32, #tpu.memory_space<vmem>>, %arg3: memref<1x32xf32, #tpu.memory_space<vmem>>, %arg4: memref<32x32xf32, #tpu.memory_space<vmem>>, %arg5: memref<1x32xf32, #tpu.memory_space<vmem>>, %arg6: memref<32x32xf32, #tpu.memory_space<vmem>>, %arg7: memref<1x32xf32, #tpu.memory_space<vmem>>, %arg8: memref<32x32xf32, #tpu.memory_space<vmem>>, %arg9: memref<1x32xf32, #tpu.memory_space<vmem>>, %arg10: memref<16x32xf32, #tpu.memory_space<vmem>>, %arg11: memref<16x32xf32, #tpu.memory_space<vmem>>, %arg12: memref<16x32xf32, #tpu.memory_space<vmem>>) attributes {dimension_semantics = [#tpu.dimension_semantics<parallel>], iteration_bounds = array<i64: 1>, scalar_prefetch = 0 : i64, scratch_operands = 0 : i64, tpu.core_type = #tpu.core_type<tc>, window_params = [{transform_indices = @transform_0, window_bounds = array<i64: 16, 32>}, {pipeline_mode = #tpu.pipeline_mode<synchronous>, transform_indices = @transform_1, window_bounds = array<i64: 1, 32>}, {pipeline_mode = #tpu.pipeline_mode<synchronous>, transform_indices = @transform_2, window_bounds = array<i64: 1, 32>}, {pipeline_mode = #tpu.pipeline_mode<synchronous>, transform_indices = @transform_3, window_bounds = array<i64: 32, 32>}, {pipeline_mode = #tpu.pipeline_mode<synchronous>, transform_indices = @transform_4, window_bounds = array<i64: 1, 32>}, {pipeline_mode = #tpu.pipeline_mode<synchronous>, transform_indices = @transform_5, window_bounds = array<i64: 32, 32>}, {pipeline_mode = #tpu.pipeline_mode<synchronous>, transform_indices = @transform_6, window_bounds = array<i64: 1, 32>}, {pipeline_mode = #tpu.pipeline_mode<synchronous>, transform_indices = @transform_7, window_bounds = array<i64: 32, 32>}, {pipeline_mode = #tpu.pipeline_mode<synchronous>, transform_indices = @transform_8, window_bounds = array<i64: 1, 32>}, {transform_indices = @transform_9, window_bounds = array<i64: 16, 32>}, {transform_indices = @transform_10, window_bounds = array<i64: 16, 32>}, {transform_indices = @transform_11, window_bounds = array<i64: 16, 32>}]} {
    %c0 = arith.constant 0 : index
    %c0_0 = arith.constant 0 : index
    %0 = vector.load %arg1[%c0, %c0_0] : memref<16x32xf32, #tpu.memory_space<vmem>>, vector<16x32xf32>
    %cst = arith.constant dense<0.000000e+00> : vector<16xf32>
    %1 = vector.multi_reduction <add>, %0, %cst [1] : vector<16x32xf32> to vector<16xf32>
    %2 = vector.shape_cast %1 : vector<16xf32> to vector<16x1xf32>
    %cst_1 = arith.constant 3.200000e+01 : f32
    %3 = vector.broadcast %cst_1 : f32 to vector<16x1xf32>
    %4 = arith.divf %2, %3 : vector<16x1xf32>
    %5 = vector.broadcast %4 : vector<16x1xf32> to vector<16x32xf32>
    %6 = arith.subf %0, %5 : vector<16x32xf32>
    %7 = arith.mulf %6, %6 : vector<16x32xf32>
    %cst_2 = arith.constant dense<0.000000e+00> : vector<16xf32>
    %8 = vector.multi_reduction <add>, %7, %cst_2 [1] : vector<16x32xf32> to vector<16xf32>
    %9 = vector.shape_cast %8 : vector<16xf32> to vector<16x1xf32>
    %cst_3 = arith.constant 3.200000e+01 : f32
    %10 = vector.broadcast %cst_3 : f32 to vector<16x1xf32>
    %11 = arith.divf %9, %10 : vector<16x1xf32>
    %12 = vector.broadcast %4 : vector<16x1xf32> to vector<16x32xf32>
    %13 = arith.subf %0, %12 : vector<16x32xf32>
    %cst_4 = arith.constant 9.99999997E-7 : f32
    %14 = vector.broadcast %cst_4 : f32 to vector<16x1xf32>
    %15 = arith.addf %11, %14 : vector<16x1xf32>
    %16 = math.rsqrt %15 : vector<16x1xf32>
    %17 = vector.broadcast %16 : vector<16x1xf32> to vector<16x32xf32>
    %18 = arith.mulf %13, %17 : vector<16x32xf32>
    %c0_5 = arith.constant 0 : index
    %c0_6 = arith.constant 0 : index
    %19 = vector.load %arg2[%c0_5, %c0_6] : memref<1x32xf32, #tpu.memory_space<vmem>>, vector<1x32xf32>
    %20 = vector.broadcast %19 : vector<1x32xf32> to vector<16x32xf32>
    %21 = arith.mulf %18, %20 : vector<16x32xf32>
    %c0_7 = arith.constant 0 : index
    %c0_8 = arith.constant 0 : index
    %22 = vector.load %arg3[%c0_7, %c0_8] : memref<1x32xf32, #tpu.memory_space<vmem>>, vector<1x32xf32>
    %23 = vector.broadcast %22 : vector<1x32xf32> to vector<16x32xf32>
    %24 = arith.addf %21, %23 : vector<16x32xf32>
    %c0_9 = arith.constant 0 : index
    %c0_10 = arith.constant 0 : index
    %25 = vector.load %arg4[%c0_9, %c0_10] : memref<32x32xf32, #tpu.memory_space<vmem>>, vector<32x32xf32>
    %cst_11 = arith.constant dense<0.000000e+00> : vector<16x32xf32>
    %26 = tpu.matmul %24, %25, %cst_11 {dimension_numbers = #tpu.dot_dimension_numbers<[1], [0], [0], [1], [0, 0, 1, 1], [], []>} : vector<16x32xf32>, vector<32x32xf32>, vector<16x32xf32> -> vector<16x32xf32>
    %c0_12 = arith.constant 0 : index
    %c0_13 = arith.constant 0 : index
    %27 = vector.load %arg5[%c0_12, %c0_13] : memref<1x32xf32, #tpu.memory_space<vmem>>, vector<1x32xf32>
    %28 = vector.broadcast %27 : vector<1x32xf32> to vector<16x32xf32>
    %29 = arith.addf %26, %28 : vector<16x32xf32>
    %c0_14 = arith.constant 0 : index
    %c0_15 = arith.constant 0 : index
    %30 = vector.load %arg10[%c0_14, %c0_15] : memref<16x32xf32, #tpu.memory_space<vmem>>, vector<16x32xf32>
    tpu.vector_store %arg10[%c0_14, %c0_15], %29 {strides = array<i32>} : memref<16x32xf32, #tpu.memory_space<vmem>>, vector<16x32xf32>,
    %c0_16 = arith.constant 0 : index
    %c0_17 = arith.constant 0 : index
    %31 = vector.load %arg6[%c0_16, %c0_17] : memref<32x32xf32, #tpu.memory_space<vmem>>, vector<32x32xf32>
    %cst_18 = arith.constant dense<0.000000e+00> : vector<16x32xf32>
    %32 = tpu.matmul %24, %31, %cst_18 {dimension_numbers = #tpu.dot_dimension_numbers<[1], [0], [0], [1], [0, 0, 1, 1], [], []>} : vector<16x32xf32>, vector<32x32xf32>, vector<16x32xf32> -> vector<16x32xf32>
    %c0_19 = arith.constant 0 : index
    %c0_20 = arith.constant 0 : index
    %33 = vector.load %arg7[%c0_19, %c0_20] : memref<1x32xf32, #tpu.memory_space<vmem>>, vector<1x32xf32>
    %34 = vector.broadcast %33 : vector<1x32xf32> to vector<16x32xf32>
    %35 = arith.addf %32, %34 : vector<16x32xf32>
    %c0_21 = arith.constant 0 : index
    %c0_22 = arith.constant 0 : index
    %36 = vector.load %arg11[%c0_21, %c0_22] : memref<16x32xf32, #tpu.memory_space<vmem>>, vector<16x32xf32>
    tpu.vector_store %arg11[%c0_21, %c0_22], %35 {strides = array<i32>} : memref<16x32xf32, #tpu.memory_space<vmem>>, vector<16x32xf32>,
    %c0_23 = arith.constant 0 : index
    %c0_24 = arith.constant 0 : index
    %37 = vector.load %arg8[%c0_23, %c0_24] : memref<32x32xf32, #tpu.memory_space<vmem>>, vector<32x32xf32>
    %cst_25 = arith.constant dense<0.000000e+00> : vector<16x32xf32>
    %38 = tpu.matmul %24, %37, %cst_25 {dimension_numbers = #tpu.dot_dimension_numbers<[1], [0], [0], [1], [0, 0, 1, 1], [], []>} : vector<16x32xf32>, vector<32x32xf32>, vector<16x32xf32> -> vector<16x32xf32>
    %c0_26 = arith.constant 0 : index
    %c0_27 = arith.constant 0 : index
    %39 = vector.load %arg9[%c0_26, %c0_27] : memref<1x32xf32, #tpu.memory_space<vmem>>, vector<1x32xf32>
    %40 = vector.broadcast %39 : vector<1x32xf32> to vector<16x32xf32>
    %41 = arith.addf %38, %40 : vector<16x32xf32>
    %c0_28 = arith.constant 0 : index
    %c0_29 = arith.constant 0 : index
    %42 = vector.load %arg12[%c0_28, %c0_29] : memref<16x32xf32, #tpu.memory_space<vmem>>, vector<16x32xf32>
    tpu.vector_store %arg12[%c0_28, %c0_29], %41 {strides = array<i32>} : memref<16x32xf32, #tpu.memory_space<vmem>>, vector<16x32xf32>,
    return
  }
  func.func @transform_0(%arg0: i32) -> (i32, i32) {
    %c0_i32 = arith.constant 0 : i32
    %c0_i32_0 = arith.constant 0 : i32
    return %arg0, %c0_i32 : i32, i32
  }
  func.func @transform_1(%arg0: i32) -> (i32, i32) {
    %c0_i32 = arith.constant 0 : i32
    %c0_i32_0 = arith.constant 0 : i32
    %c0_i32_1 = arith.constant 0 : i32
    return %c0_i32, %c0_i32_0 : i32, i32
  }
  func.func @transform_2(%arg0: i32) -> (i32, i32) {
    %c0_i32 = arith.constant 0 : i32
    %c0_i32_0 = arith.constant 0 : i32
    %c0_i32_1 = arith.constant 0 : i32
    return %c0_i32, %c0_i32_0 : i32, i32
  }
  func.func @transform_3(%arg0: i32) -> (i32, i32) {
    %c0_i32 = arith.constant 0 : i32
    %c0_i32_0 = arith.constant 0 : i32
    %c0_i32_1 = arith.constant 0 : i32
    return %c0_i32, %c0_i32_0 : i32, i32
  }
  func.func @transform_4(%arg0: i32) -> (i32, i32) {
    %c0_i32 = arith.constant 0 : i32
    %c0_i32_0 = arith.constant 0 : i32
    %c0_i32_1 = arith.constant 0 : i32
    return %c0_i32, %c0_i32_0 : i32, i32
  }
  func.func @transform_5(%arg0: i32) -> (i32, i32) {
    %c0_i32 = arith.constant 0 : i32
    %c0_i32_0 = arith.constant 0 : i32
    %c0_i32_1 = arith.constant 0 : i32
    return %c0_i32, %c0_i32_0 : i32, i32
  }
  func.func @transform_6(%arg0: i32) -> (i32, i32) {
    %c0_i32 = arith.constant 0 : i32
    %c0_i32_0 = arith.constant 0 : i32
    %c0_i32_1 = arith.constant 0 : i32
    return %c0_i32, %c0_i32_0 : i32, i32
  }
  func.func @transform_7(%arg0: i32) -> (i32, i32) {
    %c0_i32 = arith.constant 0 : i32
    %c0_i32_0 = arith.constant 0 : i32
    %c0_i32_1 = arith.constant 0 : i32
    return %c0_i32, %c0_i32_0 : i32, i32
  }
  func.func @transform_8(%arg0: i32) -> (i32, i32) {
    %c0_i32 = arith.constant 0 : i32
    %c0_i32_0 = arith.constant 0 : i32
    %c0_i32_1 = arith.constant 0 : i32
    return %c0_i32, %c0_i32_0 : i32, i32
  }
  func.func @transform_9(%arg0: i32) -> (i32, i32) {
    %c0_i32 = arith.constant 0 : i32
    %c0_i32_0 = arith.constant 0 : i32
    return %arg0, %c0_i32 : i32, i32
  }
  func.func @transform_10(%arg0: i32) -> (i32, i32) {
    %c0_i32 = arith.constant 0 : i32
    %c0_i32_0 = arith.constant 0 : i32
    return %arg0, %c0_i32 : i32, i32
  }
  func.func @transform_11(%arg0: i32) -> (i32, i32) {
    %c0_i32 = arith.constant 0 : i32
    %c0_i32_0 = arith.constant 0 : i32
    return %arg0, %c0_i32 : i32, i32
  }
}

module attributes {stable_mosaic.version = 11 : i64} {
  func.func @_ln_multi_mm_kernel(%arg0: i32, %arg1: memref<16x32xf32, #tpu.memory_space<vmem>>, %arg2: memref<1x32xf32, #tpu.memory_space<vmem>>, %arg3: memref<1x32xf32, #tpu.memory_space<vmem>>, %arg4: memref<32x32xf32, #tpu.memory_space<vmem>>, %arg5: memref<1x32xf32, #tpu.memory_space<vmem>>, %arg6: memref<16x32xf32, #tpu.memory_space<vmem>>) attributes {dimension_semantics = [#tpu.dimension_semantics<parallel>], iteration_bounds = array<i64: 1>, scalar_prefetch = 0 : i64, scratch_operands = 0 : i64, tpu.core_type = #tpu.core_type<tc>, window_params = [{transform_indices = @transform_0, window_bounds = array<i64: 16, 32>}, {pipeline_mode = #tpu.pipeline_mode<synchronous>, transform_indices = @transform_1, window_bounds = array<i64: 1, 32>}, {pipeline_mode = #tpu.pipeline_mode<synchronous>, transform_indices = @transform_2, window_bounds = array<i64: 1, 32>}, {pipeline_mode = #tpu.pipeline_mode<synchronous>, transform_indices = @transform_3, window_bounds = array<i64: 32, 32>}, {pipeline_mode = #tpu.pipeline_mode<synchronous>, transform_indices = @transform_4, window_bounds = array<i64: 1, 32>}, {transform_indices = @transform_5, window_bounds = array<i64: 16, 32>}]} {
    %c0 = arith.constant 0 : index
    %c0_0 = arith.constant 0 : index
    %0 = vector.load %arg1[%c0, %c0_0] : memref<16x32xf32, #tpu.memory_space<vmem>>, vector<16x32xf32>
    %cst = arith.constant dense<0.000000e+00> : vector<16xf32>
    %1 = vector.multi_reduction <add>, %0, %cst [1] : vector<16x32xf32> to vector<16xf32>
    %2 = vector.shape_cast %1 : vector<16xf32> to vector<16x1xf32>
    %cst_1 = arith.constant 3.200000e+01 : f32
    %3 = vector.broadcast %cst_1 : f32 to vector<16x1xf32>
    %4 = arith.divf %2, %3 : vector<16x1xf32>
    %5 = vector.broadcast %4 : vector<16x1xf32> to vector<16x32xf32>
    %6 = arith.subf %0, %5 : vector<16x32xf32>
    %7 = arith.mulf %6, %6 : vector<16x32xf32>
    %cst_2 = arith.constant dense<0.000000e+00> : vector<16xf32>
    %8 = vector.multi_reduction <add>, %7, %cst_2 [1] : vector<16x32xf32> to vector<16xf32>
    %9 = vector.shape_cast %8 : vector<16xf32> to vector<16x1xf32>
    %cst_3 = arith.constant 3.200000e+01 : f32
    %10 = vector.broadcast %cst_3 : f32 to vector<16x1xf32>
    %11 = arith.divf %9, %10 : vector<16x1xf32>
    %12 = vector.broadcast %4 : vector<16x1xf32> to vector<16x32xf32>
    %13 = arith.subf %0, %12 : vector<16x32xf32>
    %cst_4 = arith.constant 9.99999997E-7 : f32
    %14 = vector.broadcast %cst_4 : f32 to vector<16x1xf32>
    %15 = arith.addf %11, %14 : vector<16x1xf32>
    %16 = math.rsqrt %15 : vector<16x1xf32>
    %17 = vector.broadcast %16 : vector<16x1xf32> to vector<16x32xf32>
    %18 = arith.mulf %13, %17 : vector<16x32xf32>
    %c0_5 = arith.constant 0 : index
    %c0_6 = arith.constant 0 : index
    %19 = vector.load %arg2[%c0_5, %c0_6] : memref<1x32xf32, #tpu.memory_space<vmem>>, vector<1x32xf32>
    %20 = vector.broadcast %19 : vector<1x32xf32> to vector<16x32xf32>
    %21 = arith.mulf %18, %20 : vector<16x32xf32>
    %c0_7 = arith.constant 0 : index
    %c0_8 = arith.constant 0 : index
    %22 = vector.load %arg3[%c0_7, %c0_8] : memref<1x32xf32, #tpu.memory_space<vmem>>, vector<1x32xf32>
    %23 = vector.broadcast %22 : vector<1x32xf32> to vector<16x32xf32>
    %24 = arith.addf %21, %23 : vector<16x32xf32>
    %c0_9 = arith.constant 0 : index
    %c0_10 = arith.constant 0 : index
    %25 = vector.load %arg4[%c0_9, %c0_10] : memref<32x32xf32, #tpu.memory_space<vmem>>, vector<32x32xf32>
    %cst_11 = arith.constant dense<0.000000e+00> : vector<16x32xf32>
    %26 = tpu.matmul %24, %25, %cst_11 {dimension_numbers = #tpu.dot_dimension_numbers<[1], [0], [0], [1], [0, 0, 1, 1], [], []>} : vector<16x32xf32>, vector<32x32xf32>, vector<16x32xf32> -> vector<16x32xf32>
    %c0_12 = arith.constant 0 : index
    %c0_13 = arith.constant 0 : index
    %27 = vector.load %arg5[%c0_12, %c0_13] : memref<1x32xf32, #tpu.memory_space<vmem>>, vector<1x32xf32>
    %28 = vector.broadcast %27 : vector<1x32xf32> to vector<16x32xf32>
    %29 = arith.addf %26, %28 : vector<16x32xf32>
    %c0_14 = arith.constant 0 : index
    %c0_15 = arith.constant 0 : index
    %30 = vector.load %arg6[%c0_14, %c0_15] : memref<16x32xf32, #tpu.memory_space<vmem>>, vector<16x32xf32>
    tpu.vector_store %arg6[%c0_14, %c0_15], %29 {strides = array<i32>} : memref<16x32xf32, #tpu.memory_space<vmem>>, vector<16x32xf32>,
    return
  }
  func.func @transform_0(%arg0: i32) -> (i32, i32) {
    %c0_i32 = arith.constant 0 : i32
    %c0_i32_0 = arith.constant 0 : i32
    return %arg0, %c0_i32 : i32, i32
  }
  func.func @transform_1(%arg0: i32) -> (i32, i32) {
    %c0_i32 = arith.constant 0 : i32
    %c0_i32_0 = arith.constant 0 : i32
    %c0_i32_1 = arith.constant 0 : i32
    return %c0_i32, %c0_i32_0 : i32, i32
  }
  func.func @transform_2(%arg0: i32) -> (i32, i32) {
    %c0_i32 = arith.constant 0 : i32
    %c0_i32_0 = arith.constant 0 : i32
    %c0_i32_1 = arith.constant 0 : i32
    return %c0_i32, %c0_i32_0 : i32, i32
  }
  func.func @transform_3(%arg0: i32) -> (i32, i32) {
    %c0_i32 = arith.constant 0 : i32
    %c0_i32_0 = arith.constant 0 : i32
    %c0_i32_1 = arith.constant 0 : i32
    return %c0_i32, %c0_i32_0 : i32, i32
  }
  func.func @transform_4(%arg0: i32) -> (i32, i32) {
    %c0_i32 = arith.constant 0 : i32
    %c0_i32_0 = arith.constant 0 : i32
    %c0_i32_1 = arith.constant 0 : i32
    return %c0_i32, %c0_i32_0 : i32, i32
  }
  func.func @transform_5(%arg0: i32) -> (i32, i32) {
    %c0_i32 = arith.constant 0 : i32
    %c0_i32_0 = arith.constant 0 : i32
    return %arg0, %c0_i32 : i32, i32
  }
}

module attributes {stable_mosaic.version = 11 : i64} {
  func.func @_mha_ctx_kernel(%arg0: i32, %arg1: memref<1x8x32xf32, #tpu.memory_space<vmem>>, %arg2: memref<1x4x32xf32, #tpu.memory_space<vmem>>, %arg3: memref<1x4x32xf32, #tpu.memory_space<vmem>>, %arg4: memref<1x8x32xf32, #tpu.memory_space<vmem>>, %arg5: memref<1x4x8x4xf32, #tpu.memory_space<vmem>>) attributes {dimension_semantics = [#tpu.dimension_semantics<parallel>], iteration_bounds = array<i64: 2>, scalar_prefetch = 0 : i64, scratch_operands = 0 : i64, tpu.core_type = #tpu.core_type<tc>, window_params = [{transform_indices = @transform_0, window_bounds = array<i64: 1, 8, 32>}, {transform_indices = @transform_1, window_bounds = array<i64: 1, 4, 32>}, {transform_indices = @transform_2, window_bounds = array<i64: 1, 4, 32>}, {transform_indices = @transform_3, window_bounds = array<i64: 1, 8, 32>}, {transform_indices = @transform_4, window_bounds = array<i64: 1, 4, 8, 4>}]} {
    %c0 = arith.constant 0 : index
    %c0_0 = arith.constant 0 : index
    %c0_1 = arith.constant 0 : index
    %0 = vector.load %arg1[%c0, %c0_0, %c0_1] : memref<1x8x32xf32, #tpu.memory_space<vmem>>, vector<1x8x32xf32>
    %1 = vector.shape_cast %0 : vector<1x8x32xf32> to vector<8x32xf32>
    %c0_2 = arith.constant 0 : index
    %c0_3 = arith.constant 0 : index
    %c0_4 = arith.constant 0 : index
    %2 = vector.load %arg2[%c0_2, %c0_3, %c0_4] : memref<1x4x32xf32, #tpu.memory_space<vmem>>, vector<1x4x32xf32>
    %3 = vector.shape_cast %2 : vector<1x4x32xf32> to vector<4x32xf32>
    %c0_5 = arith.constant 0 : index
    %c0_6 = arith.constant 0 : index
    %c0_7 = arith.constant 0 : index
    %4 = vector.load %arg3[%c0_5, %c0_6, %c0_7] : memref<1x4x32xf32, #tpu.memory_space<vmem>>, vector<1x4x32xf32>
    %5 = vector.shape_cast %4 : vector<1x4x32xf32> to vector<4x32xf32>
    %6 = vector.extract_strided_slice %1 {offsets = [0, 0], sizes = [8, 8], strides = [1, 1]} : vector<8x32xf32> to vector<8x8xf32>
    %7 = vector.extract_strided_slice %3 {offsets = [0, 0], sizes = [4, 8], strides = [1, 1]} : vector<4x32xf32> to vector<4x8xf32>
    %cst = arith.constant dense<0.000000e+00> : vector<8x4xf32>
    %8 = tpu.matmul %6, %7, %cst {dimension_numbers = #tpu.dot_dimension_numbers<[1], [1], [0], [0], [0, 0, 1, 0], [], []>} : vector<8x8xf32>, vector<4x8xf32>, vector<8x4xf32> -> vector<8x4xf32>
    %cst_8 = arith.constant 0.353553385 : f32
    %9 = vector.broadcast %cst_8 : f32 to vector<8x4xf32>
    %10 = arith.mulf %8, %9 : vector<8x4xf32>
    %cst_9 = arith.constant dense<0xFF800000> : vector<8xf32>
    %11 = vector.multi_reduction <maximumf>, %10, %cst_9 [1] : vector<8x4xf32> to vector<8xf32>
    %12 = vector.shape_cast %11 : vector<8xf32> to vector<8x1xf32>
    %13 = vector.broadcast %12 : vector<8x1xf32> to vector<8x4xf32>
    %14 = arith.subf %10, %13 : vector<8x4xf32>
    %15 = math.exp %14 : vector<8x4xf32>
    %cst_10 = arith.constant dense<0.000000e+00> : vector<8xf32>
    %16 = vector.multi_reduction <add>, %15, %cst_10 [1] : vector<8x4xf32> to vector<8xf32>
    %17 = vector.shape_cast %16 : vector<8xf32> to vector<8x1xf32>
    %18 = tpu.reciprocal %17 {approx = true} : vector<8x1xf32> -> vector<8x1xf32>
    %19 = vector.broadcast %18 : vector<8x1xf32> to vector<8x4xf32>
    %20 = arith.mulf %15, %19 : vector<8x4xf32>
    %c0_11 = arith.constant 0 : index
    %c0_12 = arith.constant 0 : index
    %c0_13 = arith.constant 0 : index
    %c0_14 = arith.constant 0 : index
    %21 = vector.load %arg5[%c0_11, %c0_12, %c0_13, %c0_14] : memref<1x4x8x4xf32, #tpu.memory_space<vmem>>, vector<1x1x8x4xf32>
    %22 = vector.shape_cast %21 : vector<1x1x8x4xf32> to vector<8x4xf32>
    %23 = vector.shape_cast %20 : vector<8x4xf32> to vector<1x1x8x4xf32>
    tpu.vector_store %arg5[%c0_11, %c0_12, %c0_13, %c0_14], %23 {strides = array<i32>} : memref<1x4x8x4xf32, #tpu.memory_space<vmem>>, vector<1x1x8x4xf32>,
    %24 = vector.extract_strided_slice %5 {offsets = [0, 0], sizes = [4, 8], strides = [1, 1]} : vector<4x32xf32> to vector<4x8xf32>
    %cst_15 = arith.constant dense<0.000000e+00> : vector<8x8xf32>
    %25 = tpu.matmul %20, %24, %cst_15 {dimension_numbers = #tpu.dot_dimension_numbers<[1], [0], [0], [1], [0, 0, 1, 1], [], []>} : vector<8x4xf32>, vector<4x8xf32>, vector<8x8xf32> -> vector<8x8xf32>
    %26 = vector.extract_strided_slice %1 {offsets = [0, 8], sizes = [8, 8], strides = [1, 1]} : vector<8x32xf32> to vector<8x8xf32>
    %27 = vector.extract_strided_slice %3 {offsets = [0, 8], sizes = [4, 8], strides = [1, 1]} : vector<4x32xf32> to vector<4x8xf32>
    %cst_16 = arith.constant dense<0.000000e+00> : vector<8x4xf32>
    %28 = tpu.matmul %26, %27, %cst_16 {dimension_numbers = #tpu.dot_dimension_numbers<[1], [1], [0], [0], [0, 0, 1, 0], [], []>} : vector<8x8xf32>, vector<4x8xf32>, vector<8x4xf32> -> vector<8x4xf32>
    %cst_17 = arith.constant 0.353553385 : f32
    %29 = vector.broadcast %cst_17 : f32 to vector<8x4xf32>
    %30 = arith.mulf %28, %29 : vector<8x4xf32>
    %cst_18 = arith.constant dense<0xFF800000> : vector<8xf32>
    %31 = vector.multi_reduction <maximumf>, %30, %cst_18 [1] : vector<8x4xf32> to vector<8xf32>
    %32 = vector.shape_cast %31 : vector<8xf32> to vector<8x1xf32>
    %33 = vector.broadcast %32 : vector<8x1xf32> to vector<8x4xf32>
    %34 = arith.subf %30, %33 : vector<8x4xf32>
    %35 = math.exp %34 : vector<8x4xf32>
    %cst_19 = arith.constant dense<0.000000e+00> : vector<8xf32>
    %36 = vector.multi_reduction <add>, %35, %cst_19 [1] : vector<8x4xf32> to vector<8xf32>
    %37 = vector.shape_cast %36 : vector<8xf32> to vector<8x1xf32>
    %38 = tpu.reciprocal %37 {approx = true} : vector<8x1xf32> -> vector<8x1xf32>
    %39 = vector.broadcast %38 : vector<8x1xf32> to vector<8x4xf32>
    %40 = arith.mulf %35, %39 : vector<8x4xf32>
    %c0_20 = arith.constant 0 : index
    %c1 = arith.constant 1 : index
    %c0_21 = arith.constant 0 : index
    %c0_22 = arith.constant 0 : index
    %41 = vector.load %arg5[%c0_20, %c1, %c0_21, %c0_22] : memref<1x4x8x4xf32, #tpu.memory_space<vmem>>, vector<1x1x8x4xf32>
    %42 = vector.shape_cast %41 : vector<1x1x8x4xf32> to vector<8x4xf32>
    %43 = vector.shape_cast %40 : vector<8x4xf32> to vector<1x1x8x4xf32>
    tpu.vector_store %arg5[%c0_20, %c1, %c0_21, %c0_22], %43 {strides = array<i32>} : memref<1x4x8x4xf32, #tpu.memory_space<vmem>>, vector<1x1x8x4xf32>,
    %44 = vector.extract_strided_slice %5 {offsets = [0, 8], sizes = [4, 8], strides = [1, 1]} : vector<4x32xf32> to vector<4x8xf32>
    %cst_23 = arith.constant dense<0.000000e+00> : vector<8x8xf32>
    %45 = tpu.matmul %40, %44, %cst_23 {dimension_numbers = #tpu.dot_dimension_numbers<[1], [0], [0], [1], [0, 0, 1, 1], [], []>} : vector<8x4xf32>, vector<4x8xf32>, vector<8x8xf32> -> vector<8x8xf32>
    %46 = vector.extract_strided_slice %1 {offsets = [0, 16], sizes = [8, 8], strides = [1, 1]} : vector<8x32xf32> to vector<8x8xf32>
    %47 = vector.extract_strided_slice %3 {offsets = [0, 16], sizes = [4, 8], strides = [1, 1]} : vector<4x32xf32> to vector<4x8xf32>
    %cst_24 = arith.constant dense<0.000000e+00> : vector<8x4xf32>
    %48 = tpu.matmul %46, %47, %cst_24 {dimension_numbers = #tpu.dot_dimension_numbers<[1], [1], [0], [0], [0, 0, 1, 0], [], []>} : vector<8x8xf32>, vector<4x8xf32>, vector<8x4xf32> -> vector<8x4xf32>
    %cst_25 = arith.constant 0.353553385 : f32
    %49 = vector.broadcast %cst_25 : f32 to vector<8x4xf32>
    %50 = arith.mulf %48, %49 : vector<8x4xf32>
    %cst_26 = arith.constant dense<0xFF800000> : vector<8xf32>
    %51 = vector.multi_reduction <maximumf>, %50, %cst_26 [1] : vector<8x4xf32> to vector<8xf32>
    %52 = vector.shape_cast %51 : vector<8xf32> to vector<8x1xf32>
    %53 = vector.broadcast %52 : vector<8x1xf32> to vector<8x4xf32>
    %54 = arith.subf %50, %53 : vector<8x4xf32>
    %55 = math.exp %54 : vector<8x4xf32>
    %cst_27 = arith.constant dense<0.000000e+00> : vector<8xf32>
    %56 = vector.multi_reduction <add>, %55, %cst_27 [1] : vector<8x4xf32> to vector<8xf32>
    %57 = vector.shape_cast %56 : vector<8xf32> to vector<8x1xf32>
    %58 = tpu.reciprocal %57 {approx = true} : vector<8x1xf32> -> vector<8x1xf32>
    %59 = vector.broadcast %58 : vector<8x1xf32> to vector<8x4xf32>
    %60 = arith.mulf %55, %59 : vector<8x4xf32>
    %c0_28 = arith.constant 0 : index
    %c2 = arith.constant 2 : index
    %c0_29 = arith.constant 0 : index
    %c0_30 = arith.constant 0 : index
    %61 = vector.load %arg5[%c0_28, %c2, %c0_29, %c0_30] : memref<1x4x8x4xf32, #tpu.memory_space<vmem>>, vector<1x1x8x4xf32>
    %62 = vector.shape_cast %61 : vector<1x1x8x4xf32> to vector<8x4xf32>
    %63 = vector.shape_cast %60 : vector<8x4xf32> to vector<1x1x8x4xf32>
    tpu.vector_store %arg5[%c0_28, %c2, %c0_29, %c0_30], %63 {strides = array<i32>} : memref<1x4x8x4xf32, #tpu.memory_space<vmem>>, vector<1x1x8x4xf32>,
    %64 = vector.extract_strided_slice %5 {offsets = [0, 16], sizes = [4, 8], strides = [1, 1]} : vector<4x32xf32> to vector<4x8xf32>
    %cst_31 = arith.constant dense<0.000000e+00> : vector<8x8xf32>
    %65 = tpu.matmul %60, %64, %cst_31 {dimension_numbers = #tpu.dot_dimension_numbers<[1], [0], [0], [1], [0, 0, 1, 1], [], []>} : vector<8x4xf32>, vector<4x8xf32>, vector<8x8xf32> -> vector<8x8xf32>
    %66 = vector.extract_strided_slice %1 {offsets = [0, 24], sizes = [8, 8], strides = [1, 1]} : vector<8x32xf32> to vector<8x8xf32>
    %67 = vector.extract_strided_slice %3 {offsets = [0, 24], sizes = [4, 8], strides = [1, 1]} : vector<4x32xf32> to vector<4x8xf32>
    %cst_32 = arith.constant dense<0.000000e+00> : vector<8x4xf32>
    %68 = tpu.matmul %66, %67, %cst_32 {dimension_numbers = #tpu.dot_dimension_numbers<[1], [1], [0], [0], [0, 0, 1, 0], [], []>} : vector<8x8xf32>, vector<4x8xf32>, vector<8x4xf32> -> vector<8x4xf32>
    %cst_33 = arith.constant 0.353553385 : f32
    %69 = vector.broadcast %cst_33 : f32 to vector<8x4xf32>
    %70 = arith.mulf %68, %69 : vector<8x4xf32>
    %cst_34 = arith.constant dense<0xFF800000> : vector<8xf32>
    %71 = vector.multi_reduction <maximumf>, %70, %cst_34 [1] : vector<8x4xf32> to vector<8xf32>
    %72 = vector.shape_cast %71 : vector<8xf32> to vector<8x1xf32>
    %73 = vector.broadcast %72 : vector<8x1xf32> to vector<8x4xf32>
    %74 = arith.subf %70, %73 : vector<8x4xf32>
    %75 = math.exp %74 : vector<8x4xf32>
    %cst_35 = arith.constant dense<0.000000e+00> : vector<8xf32>
    %76 = vector.multi_reduction <add>, %75, %cst_35 [1] : vector<8x4xf32> to vector<8xf32>
    %77 = vector.shape_cast %76 : vector<8xf32> to vector<8x1xf32>
    %78 = tpu.reciprocal %77 {approx = true} : vector<8x1xf32> -> vector<8x1xf32>
    %79 = vector.broadcast %78 : vector<8x1xf32> to vector<8x4xf32>
    %80 = arith.mulf %75, %79 : vector<8x4xf32>
    %c0_36 = arith.constant 0 : index
    %c3 = arith.constant 3 : index
    %c0_37 = arith.constant 0 : index
    %c0_38 = arith.constant 0 : index
    %81 = vector.load %arg5[%c0_36, %c3, %c0_37, %c0_38] : memref<1x4x8x4xf32, #tpu.memory_space<vmem>>, vector<1x1x8x4xf32>
    %82 = vector.shape_cast %81 : vector<1x1x8x4xf32> to vector<8x4xf32>
    %83 = vector.shape_cast %80 : vector<8x4xf32> to vector<1x1x8x4xf32>
    tpu.vector_store %arg5[%c0_36, %c3, %c0_37, %c0_38], %83 {strides = array<i32>} : memref<1x4x8x4xf32, #tpu.memory_space<vmem>>, vector<1x1x8x4xf32>,
    %84 = vector.extract_strided_slice %5 {offsets = [0, 24], sizes = [4, 8], strides = [1, 1]} : vector<4x32xf32> to vector<4x8xf32>
    %cst_39 = arith.constant dense<0.000000e+00> : vector<8x8xf32>
    %85 = tpu.matmul %80, %84, %cst_39 {dimension_numbers = #tpu.dot_dimension_numbers<[1], [0], [0], [1], [0, 0, 1, 1], [], []>} : vector<8x4xf32>, vector<4x8xf32>, vector<8x8xf32> -> vector<8x8xf32>
    %86 = tpu.concatenate %25, %45, %65, %85 in 1 : vector<8x8xf32>, vector<8x8xf32>, vector<8x8xf32>, vector<8x8xf32> -> vector<8x32xf32>
    %c0_40 = arith.constant 0 : index
    %c0_41 = arith.constant 0 : index
    %c0_42 = arith.constant 0 : index
    %87 = vector.load %arg4[%c0_40, %c0_41, %c0_42] : memref<1x8x32xf32, #tpu.memory_space<vmem>>, vector<1x8x32xf32>
    %88 = vector.shape_cast %87 : vector<1x8x32xf32> to vector<8x32xf32>
    %89 = vector.shape_cast %86 : vector<8x32xf32> to vector<1x8x32xf32>
    tpu.vector_store %arg4[%c0_40, %c0_41, %c0_42], %89 {strides = array<i32>} : memref<1x8x32xf32, #tpu.memory_space<vmem>>, vector<1x8x32xf32>,
    return
  }
  func.func @transform_0(%arg0: i32) -> (i32, i32, i32) {
    %c0_i32 = arith.constant 0 : i32
    %c0_i32_0 = arith.constant 0 : i32
    %c0_i32_1 = arith.constant 0 : i32
    return %arg0, %c0_i32, %c0_i32_0 : i32, i32, i32
  }
  func.func @transform_1(%arg0: i32) -> (i32, i32, i32) {
    %c0_i32 = arith.constant 0 : i32
    %c0_i32_0 = arith.constant 0 : i32
    %c0_i32_1 = arith.constant 0 : i32
    return %arg0, %c0_i32, %c0_i32_0 : i32, i32, i32
  }
  func.func @transform_2(%arg0: i32) -> (i32, i32, i32) {
    %c0_i32 = arith.constant 0 : i32
    %c0_i32_0 = arith.constant 0 : i32
    %c0_i32_1 = arith.constant 0 : i32
    return %arg0, %c0_i32, %c0_i32_0 : i32, i32, i32
  }
  func.func @transform_3(%arg0: i32) -> (i32, i32, i32) {
    %c0_i32 = arith.constant 0 : i32
    %c0_i32_0 = arith.constant 0 : i32
    %c0_i32_1 = arith.constant 0 : i32
    return %arg0, %c0_i32, %c0_i32_0 : i32, i32, i32
  }
  func.func @transform_4(%arg0: i32) -> (i32, i32, i32, i32) {
    %c0_i32 = arith.constant 0 : i32
    %c0_i32_0 = arith.constant 0 : i32
    %c0_i32_1 = arith.constant 0 : i32
    %c0_i32_2 = arith.constant 0 : i32
    return %arg0, %c0_i32, %c0_i32_0, %c0_i32_1 : i32, i32, i32, i32
  }
}

module attributes {stable_mosaic.version = 11 : i64} {
  func.func @_ffn_kernel(%arg0: i32, %arg1: i32, %arg2: memref<16x32xf32, #tpu.memory_space<vmem>>, %arg3: memref<1x32xf32, #tpu.memory_space<vmem>>, %arg4: memref<1x32xf32, #tpu.memory_space<vmem>>, %arg5: memref<32x64xf32, #tpu.memory_space<vmem>>, %arg6: memref<1x64xf32, #tpu.memory_space<vmem>>, %arg7: memref<64x32xf32, #tpu.memory_space<vmem>>, %arg8: memref<1x32xf32, #tpu.memory_space<vmem>>, %arg9: memref<16x32xf32, #tpu.memory_space<vmem>>, %arg10: memref<16x32xf32, #tpu.memory_space<vmem>>, %arg11: memref<16x32xf32, #tpu.memory_space<vmem>>) attributes {dimension_semantics = [#tpu.dimension_semantics<parallel>, #tpu.dimension_semantics<arbitrary>], iteration_bounds = array<i64: 1, 1>, scalar_prefetch = 0 : i64, scratch_operands = 2 : i64, tpu.core_type = #tpu.core_type<tc>, window_params = [{transform_indices = @transform_0, window_bounds = array<i64: 16, 32>}, {pipeline_mode = #tpu.pipeline_mode<synchronous>, transform_indices = @transform_1, window_bounds = array<i64: 1, 32>}, {pipeline_mode = #tpu.pipeline_mode<synchronous>, transform_indices = @transform_2, window_bounds = array<i64: 1, 32>}, {transform_indices = @transform_3, window_bounds = array<i64: 32, 64>}, {transform_indices = @transform_4, window_bounds = array<i64: 1, 64>}, {transform_indices = @transform_5, window_bounds = array<i64: 64, 32>}, {pipeline_mode = #tpu.pipeline_mode<synchronous>, transform_indices = @transform_6, window_bounds = array<i64: 1, 32>}, {transform_indices = @transform_7, window_bounds = array<i64: 16, 32>}]} {
    %c0_i32 = arith.constant 0 : i32
    %0 = arith.cmpi eq, %arg1, %c0_i32 : i32
    %1 = arith.extui %0 : i1 to i32
    %c0_i32_0 = arith.constant 0 : i32
    %2 = arith.cmpi ne, %1, %c0_i32_0 : i32
    scf.if %2 {
      %c0_16 = arith.constant 0 : index
      %c0_17 = arith.constant 0 : index
      %19 = vector.load %arg2[%c0_16, %c0_17] : memref<16x32xf32, #tpu.memory_space<vmem>>, vector<16x32xf32>
      %cst_18 = arith.constant dense<0.000000e+00> : vector<16xf32>
      %20 = vector.multi_reduction <add>, %19, %cst_18 [1] : vector<16x32xf32> to vector<16xf32>
      %21 = vector.shape_cast %20 : vector<16xf32> to vector<16x1xf32>
      %cst_19 = arith.constant 3.200000e+01 : f32
      %22 = vector.broadcast %cst_19 : f32 to vector<16x1xf32>
      %23 = arith.divf %21, %22 : vector<16x1xf32>
      %24 = vector.broadcast %23 : vector<16x1xf32> to vector<16x32xf32>
      %25 = arith.subf %19, %24 : vector<16x32xf32>
      %26 = arith.mulf %25, %25 : vector<16x32xf32>
      %cst_20 = arith.constant dense<0.000000e+00> : vector<16xf32>
      %27 = vector.multi_reduction <add>, %26, %cst_20 [1] : vector<16x32xf32> to vector<16xf32>
      %28 = vector.shape_cast %27 : vector<16xf32> to vector<16x1xf32>
      %cst_21 = arith.constant 3.200000e+01 : f32
      %29 = vector.broadcast %cst_21 : f32 to vector<16x1xf32>
      %30 = arith.divf %28, %29 : vector<16x1xf32>
      %31 = vector.broadcast %23 : vector<16x1xf32> to vector<16x32xf32>
      %32 = arith.subf %19, %31 : vector<16x32xf32>
      %cst_22 = arith.constant 9.99999997E-7 : f32
      %33 = vector.broadcast %cst_22 : f32 to vector<16x1xf32>
      %34 = arith.addf %30, %33 : vector<16x1xf32>
      %35 = math.rsqrt %34 : vector<16x1xf32>
      %36 = vector.broadcast %35 : vector<16x1xf32> to vector<16x32xf32>
      %37 = arith.mulf %32, %36 : vector<16x32xf32>
      %c0_23 = arith.constant 0 : index
      %c0_24 = arith.constant 0 : index
      %38 = vector.load %arg3[%c0_23, %c0_24] : memref<1x32xf32, #tpu.memory_space<vmem>>, vector<1x32xf32>
      %39 = vector.broadcast %38 : vector<1x32xf32> to vector<16x32xf32>
      %40 = arith.mulf %37, %39 : vector<16x32xf32>
      %c0_25 = arith.constant 0 : index
      %c0_26 = arith.constant 0 : index
      %41 = vector.load %arg4[%c0_25, %c0_26] : memref<1x32xf32, #tpu.memory_space<vmem>>, vector<1x32xf32>
      %42 = vector.broadcast %41 : vector<1x32xf32> to vector<16x32xf32>
      %43 = arith.addf %40, %42 : vector<16x32xf32>
      %c0_27 = arith.constant 0 : index
      %c0_28 = arith.constant 0 : index
      %44 = vector.load %arg10[%c0_27, %c0_28] : memref<16x32xf32, #tpu.memory_space<vmem>>, vector<16x32xf32>
      tpu.vector_store %arg10[%c0_27, %c0_28], %43 {strides = array<i32>} : memref<16x32xf32, #tpu.memory_space<vmem>>, vector<16x32xf32>,
      %cst_29 = arith.constant 0.000000e+00 : f32
      %45 = vector.broadcast %cst_29 : f32 to vector<16x32xf32>
      %c0_30 = arith.constant 0 : index
      %c0_31 = arith.constant 0 : index
      %46 = vector.load %arg11[%c0_30, %c0_31] : memref<16x32xf32, #tpu.memory_space<vmem>>, vector<16x32xf32>
      tpu.vector_store %arg11[%c0_30, %c0_31], %45 {strides = array<i32>} : memref<16x32xf32, #tpu.memory_space<vmem>>, vector<16x32xf32>,
    } else {
    }
    %c0 = arith.constant 0 : index
    %c0_1 = arith.constant 0 : index
    %3 = vector.load %arg10[%c0, %c0_1] : memref<16x32xf32, #tpu.memory_space<vmem>>, vector<16x32xf32>
    %c0_2 = arith.constant 0 : index
    %c0_3 = arith.constant 0 : index
    %4 = vector.load %arg5[%c0_2, %c0_3] : memref<32x64xf32, #tpu.memory_space<vmem>>, vector<32x64xf32>
    %cst = arith.constant dense<0.000000e+00> : vector<16x64xf32>
    %5 = tpu.matmul %3, %4, %cst {dimension_numbers = #tpu.dot_dimension_numbers<[1], [0], [0], [1], [0, 0, 1, 1], [], []>} : vector<16x32xf32>, vector<32x64xf32>, vector<16x64xf32> -> vector<16x64xf32>
    %c0_4 = arith.constant 0 : index
    %c0_5 = arith.constant 0 : index
    %6 = vector.load %arg6[%c0_4, %c0_5] : memref<1x64xf32, #tpu.memory_space<vmem>>, vector<1x64xf32>
    %7 = vector.broadcast %6 : vector<1x64xf32> to vector<16x64xf32>
    %8 = arith.addf %5, %7 : vector<16x64xf32>
    %cst_6 = arith.constant 0.000000e+00 : f32
    %9 = vector.broadcast %cst_6 : f32 to vector<16x64xf32>
    %10 = arith.maximumf %8, %9 : vector<16x64xf32>
    %c0_7 = arith.constant 0 : index
    %c0_8 = arith.constant 0 : index
    %11 = vector.load %arg11[%c0_7, %c0_8] : memref<16x32xf32, #tpu.memory_space<vmem>>, vector<16x32xf32>
    %c0_9 = arith.constant 0 : index
    %c0_10 = arith.constant 0 : index
    %12 = vector.load %arg7[%c0_9, %c0_10] : memref<64x32xf32, #tpu.memory_space<vmem>>, vector<64x32xf32>
    %cst_11 = arith.constant dense<0.000000e+00> : vector<16x32xf32>
    %13 = tpu.matmul %10, %12, %cst_11 {dimension_numbers = #tpu.dot_dimension_numbers<[1], [0], [0], [1], [0, 0, 1, 1], [], []>} : vector<16x64xf32>, vector<64x32xf32>, vector<16x32xf32> -> vector<16x32xf32>
    %14 = arith.addf %11, %13 : vector<16x32xf32>
    %c0_12 = arith.constant 0 : index
    %c0_13 = arith.constant 0 : index
    %15 = vector.load %arg11[%c0_12, %c0_13] : memref<16x32xf32, #tpu.memory_space<vmem>>, vector<16x32xf32>
    tpu.vector_store %arg11[%c0_12, %c0_13], %14 {strides = array<i32>} : memref<16x32xf32, #tpu.memory_space<vmem>>, vector<16x32xf32>,
    %c0_i32_14 = arith.constant 0 : i32
    %16 = arith.cmpi eq, %arg1, %c0_i32_14 : i32
    %17 = arith.extui %16 : i1 to i32
    %c0_i32_15 = arith.constant 0 : i32
    %18 = arith.cmpi ne, %17, %c0_i32_15 : i32
    scf.if %18 {
      %c0_16 = arith.constant 0 : index
      %c0_17 = arith.constant 0 : index
      %19 = vector.load %arg11[%c0_16, %c0_17] : memref<16x32xf32, #tpu.memory_space<vmem>>, vector<16x32xf32>
      %c0_18 = arith.constant 0 : index
      %c0_19 = arith.constant 0 : index
      %20 = vector.load %arg8[%c0_18, %c0_19] : memref<1x32xf32, #tpu.memory_space<vmem>>, vector<1x32xf32>
      %21 = vector.broadcast %20 : vector<1x32xf32> to vector<16x32xf32>
      %22 = arith.addf %19, %21 : vector<16x32xf32>
      %c0_20 = arith.constant 0 : index
      %c0_21 = arith.constant 0 : index
      %23 = vector.load %arg2[%c0_20, %c0_21] : memref<16x32xf32, #tpu.memory_space<vmem>>, vector<16x32xf32>
      %24 = arith.addf %22, %23 : vector<16x32xf32>
      %c0_22 = arith.constant 0 : index
      %c0_23 = arith.constant 0 : index
      %25 = vector.load %arg9[%c0_22, %c0_23] : memref<16x32xf32, #tpu.memory_space<vmem>>, vector<16x32xf32>
      tpu.vector_store %arg9[%c0_22, %c0_23], %24 {strides = array<i32>} : memref<16x32xf32, #tpu.memory_space<vmem>>, vector<16x32xf32>,
    } else {
    }
    return
  }
  func.func @transform_0(%arg0: i32, %arg1: i32) -> (i32, i32) {
    %c0_i32 = arith.constant 0 : i32
    %c0_i32_0 = arith.constant 0 : i32
    return %arg0, %c0_i32 : i32, i32
  }
  func.func @transform_1(%arg0: i32, %arg1: i32) -> (i32, i32) {
    %c0_i32 = arith.constant 0 : i32
    %c0_i32_0 = arith.constant 0 : i32
    %c0_i32_1 = arith.constant 0 : i32
    return %c0_i32, %c0_i32_0 : i32, i32
  }
  func.func @transform_2(%arg0: i32, %arg1: i32) -> (i32, i32) {
    %c0_i32 = arith.constant 0 : i32
    %c0_i32_0 = arith.constant 0 : i32
    %c0_i32_1 = arith.constant 0 : i32
    return %c0_i32, %c0_i32_0 : i32, i32
  }
  func.func @transform_3(%arg0: i32, %arg1: i32) -> (i32, i32) {
    %c0_i32 = arith.constant 0 : i32
    %c0_i32_0 = arith.constant 0 : i32
    return %c0_i32, %arg1 : i32, i32
  }
  func.func @transform_4(%arg0: i32, %arg1: i32) -> (i32, i32) {
    %c0_i32 = arith.constant 0 : i32
    %c0_i32_0 = arith.constant 0 : i32
    return %c0_i32, %arg1 : i32, i32
  }
  func.func @transform_5(%arg0: i32, %arg1: i32) -> (i32, i32) {
    %c0_i32 = arith.constant 0 : i32
    %c0_i32_0 = arith.constant 0 : i32
    return %arg1, %c0_i32 : i32, i32
  }
  func.func @transform_6(%arg0: i32, %arg1: i32) -> (i32, i32) {
    %c0_i32 = arith.constant 0 : i32
    %c0_i32_0 = arith.constant 0 : i32
    %c0_i32_1 = arith.constant 0 : i32
    return %c0_i32, %c0_i32_0 : i32, i32
  }
  func.func @transform_7(%arg0: i32, %arg1: i32) -> (i32, i32) {
    %c0_i32 = arith.constant 0 : i32
    %c0_i32_0 = arith.constant 0 : i32
    return %arg0, %c0_i32 : i32, i32
  }
}

</mosaic_0001>

<bundles_post_ra>
// kernel: _lambda_.12
= control target key start
LH: loop header
LB: loop body
LE: loop exit
PB: predicated region body
PF: predicated region fallthrough
CT: control target
= control target key end

     0   :  { %12 = vsyncpa [#allocation3], 0  ;;  %s388_s0 = inlined_call_operand.vmem [shape: f32[8,32], index: 0, kind: input, shape index: {}]   ;;  %s389_s1 = inlined_call_operand.vmem [shape: f32[32,32], index: 1, kind: input, shape index: {}]   ;;  %s390_s2 = inlined_call_operand.vmem [shape: f32[1,32], index: 2, kind: input, shape index: {}]   ;;  %s391_s3 = inlined_call_operand.hbm [shape: f32[32,32], index: 3, kind: input, shape index: {}]   ;;  %s392_s4 = inlined_call_operand.hbm [shape: f32[1,32], index: 4, kind: input, shape index: {}]   ;;  %s393_s5 = inlined_call_operand.vmem [shape: f32[8,32], index: 5, kind: output, shape index: {0}]   ;;  %s394_s6 = inlined_call_operand.vmem [shape: f32[8,32], index: 6, kind: output, shape index: {1}]  }
   0x1   :  { %13 = vsyncpa [#allocation5], 0  ;;  %s313_s21 = smov [#allocation2]  }
   0x2   :  { %s25_s22 = sshll.u32 %s313_s21, 4  ;;  %s26_s22 = int_to_ptr.vmem [resolvable:$true] %s25_s22 }
   0x3   :  { %s277_s23 = scalar_lea.vmem %s26_s22, 512  ;;  %p282_p1 = scmp.lt.s32.totalorder %s26_s22, %s26_s22 }
   0x4   :  { %p278_p0 = scmp.ne.s32.totalorder %s26_s22, %s277_s23  ;;  %p283_p2 = scmp.lt.s32.totalorder %s277_s23, %s277_s23 }
   0x6   :  { %p284_p3 = por %p283_p2, %p282_p1 }
   0x8   :  { %p285_p4 = pnand %p284_p3, %p278_p0 }
   0xa   :  { %288 = shalt.err (!%p285_p4)
}
   0xb   :  { %s314_s24 = smov 128   ;;  %s315_s25 = smov 8  }
   0xc   :  { %31 = dma.hbm_to_vmem [thread:$0]  %s391_s3, 512, %s26_s22, [#allocation3], %s314_s24, %s314_s24, %s315_s25  }
   0xd   :  { %s316_s28 = smov [#allocation4]  }
   0xe   :  { %s38_s29 = sshll.u32 %s316_s28, 4  ;;  %s39_s29 = int_to_ptr.vmem [resolvable:$true] %s38_s29 }
   0xf   :  { %s297_s30 = scalar_lea.vmem %s39_s29, 16  ;;  %s301_s7 = scalar_lea.vmem %s39_s29, 32 }
  0x10   :  { %p298_p5 = scmp.ne.s32.totalorder %s39_s29, %s297_s30  ;;  %p302_p6 = scmp.lt.s32.totalorder %s39_s29, %s39_s29 }
  0x11   :  { %p303_p7 = scmp.lt.s32.totalorder %s301_s7, %s297_s30 }
  0x13   :  { %p304_p8 = por %p303_p7, %p302_p6 }
  0x15   :  { %p305_p9 = pnand %p304_p8, %p298_p5 }
  0x17   :  { %308 = shalt.err (!%p305_p9)
}
  0x18   :  { %41 = dma.hbm_to_vmem [thread:$0]  %s392_s4, 16, %s39_s29, [#allocation5]  }
  0x19   :  { %309 = dma.done.wait [#allocation3], 512  }
  0x1a   :  { %310 = vsyncadd [#allocation3], 4294966784 }
  0x1b   :  { %311 = dma.done.wait [#allocation5], 16  }
  0x1c   :  { %312 = vsyncadd [#allocation5], 4294967280  ;;  %v317_v0 = vmov 0.0   ;;  %vm318_vm0 = vmmov 0   ;;  %v52_v1 = vld [vmem:[%s389_s1 + $0x18] sm:$0xff]  ;;  %v51_v3 = vld [vmem:[%s389_s1 + $0x10] sm:$0xff] }
  0x1d   :  { %241 = vmatprep.subr.mxu0 %v317_v0  ;;  %252 = vmatprep.subr.mxu1 %v317_v0  ;;  %v138_v2 = vld [vmem:[#allocation2 + $0x18] sm:$0xff]  ;;  %v137_v4 = vld [vmem:[#allocation2 + $0x10] sm:$0xff]  ;;  %v50_v5 = vld [vmem:[%s389_s1 + $0x8] sm:$0xff]  ;;  %vm60_vm1 = vcmask 261120  }
  0x1e   :  { %249 = vmatprep.mubr.msk.f32.mxu0 %vm318_vm0, %v317_v0  ;;  %260 = vmatprep.mubr.msk.f32.mxu1 %vm318_vm0, %v317_v0  ;;  %v136_v6 = vld [vmem:[#allocation2 + $0x8] sm:$0xff]  ;;  %v49_v7 = vld [vmem:[%s389_s1] sm:$0xff] }
  0x1f   :  { %242 = vmatpush3.msra.mxu0 %v52_v1  ;;  %253 = vmatpush3.msra.mxu1 %v138_v2  ;;  %v135_v8 = vld [vmem:[#allocation2] sm:$0xff] }
  0x20   :  { %243 = vmatprep.subr.mxu0 %v317_v0  ;;  %254 = vmatprep.subr.mxu1 %v317_v0  ;;  %v48_v9 = vld [vmem:[%s388_s0] sm:$0xff] }
  0x21   :  { %244 = vmatpush3.msra.mxu0 %v51_v3  ;;  %255 = vmatpush3.msra.mxu1 %v137_v4  ;;  %v227_v10 = vld [vmem:[%s390_s2] ss:$0 sm:$0xff] }
  0x22   :  { %245 = vmatprep.subr.mxu0 %v317_v0  ;;  %256 = vmatprep.subr.mxu1 %v317_v0  ;;  %v229_v11 = vld [vmem:[#allocation4] ss:$0 sm:$0xff] }
  0x23   :  { %246 = vmatpush3.msra.mxu0 %v50_v5  ;;  %257 = vmatpush3.msra.mxu1 %v136_v6 }
  0x24   :  { %247 = vmatprep.subr.mxu0 %v317_v0  ;;  %258 = vmatprep.subr.mxu1 %v317_v0 }
  0x25   :  { %248 = vmatpush3.msra.mxu0 %v49_v7  ;;  %259 = vmatpush3.msra.mxu1 %v135_v8 }
  0x26   :  { %250 = vmatmul.mubr.msk.f32.vlgmr.msra.gmra.mxu0 %vm60_vm1, %v48_v9  ;;  %261 = vmatmul.mubr.msk.f32.vlgmr.msra.gmra.mxu1 %vm60_vm1, %v48_v9 }
  0xe6   :  { %v130_v12 = vpop.f32.mrf.mxu0  ;;  %v212_v13 = vpop.f32.mrf.mxu1 }
  0xe7   :  { %v131_v14 = vadd.f32 %v227_v10, %v130_v12  ;;  %v213_v15 = vadd.f32 %v229_v11, %v212_v13 }
  0xe8   :  { %v251_v16 = vpop.f32.mrf.mxu0  ;;  %v262_v17 = vpop.f32.mrf.mxu1 }
  0xe9   :  { %134 = vst.msk [vmem:[%s393_s5] sm:$0xff] %vm60_vm1, %v131_v14  ;;  %216 = vst.msk [vmem:[%s394_s6] sm:$0xff] %vm60_vm1, %v213_v15 }
  0xea   :  { %225 = vsyncpa [#allocation3], 1 }
  0xeb   :  { %226 = vsyncpa [#allocation5], 1 }

// kernel: _lambda_.10
= control target key start
LH: loop header
LB: loop body
LE: loop exit
PB: predicated region body
PF: predicated region fallthrough
CT: control target
= control target key end

     0   :  { %vm21_vm0 = vcmask 261120   ;;  %v163_v2 = vmov 0.0   ;;  %s230_s1 = inlined_call_operand.vmem [shape: f32[32,32], index: 1, kind: input, shape index: {}]   ;;  %s231_s0 = inlined_call_operand.vmem [shape: f32[16,32], index: 0, kind: input, shape index: {}]   ;;  %s232_s2 = inlined_call_operand.vmem [shape: f32[1,32], index: 2, kind: input, shape index: {}]   ;;  %s233_s3 = inlined_call_operand.vmem [shape: f32[16,32], index: 3, kind: input, shape index: {}]   ;;  %s234_s4 = inlined_call_operand.vmem [shape: f32[16,32], index: 4, kind: output, shape index: {}]  }
   0x1   :  { %v31_v0 = vld [vmem:[%s230_s1 + $0x18] sm:$0xff]  ;;  %v30_v1 = vld [vmem:[%s230_s1 + $0x10] sm:$0xff]  ;;  %23 = vst.msk [vmem:[#allocation2 + $0x8] sm:$0xff] %vm21_vm0, %v163_v2  ;;  %22 = vst.msk [vmem:[#allocation2] sm:$0xff] %vm21_vm0, %v163_v2 }
   0x2   :  { %151 = vmatprep.subr.mxu0 %v31_v0  ;;  %v26_v3 = vld [vmem:[%s231_s0] sm:$0xff]  ;;  %v29_v4 = vld [vmem:[%s230_s1 + $0x8] sm:$0xff] }
   0x3   :  { %152 = vmatpush3.msra.mxu0 %v31_v0  ;;  %159 = vmatprep.mubr.msk.f32.mxu0 %vm21_vm0, %v26_v3  ;;  %v28_v5 = vld [vmem:[%s230_s1] sm:$0xff]  ;;  %v27_v6 = vld [vmem:[%s231_s0 + $0x8] sm:$0xff] }
   0x4   :  { %153 = vmatprep.subr.mxu0 %v30_v1  ;;  %v144_v13 = vld [vmem:[%s232_s2] ss:$0 sm:$0xff]  ;;  %v133_v15 = vld [vmem:[%s233_s3 + $0x8] sm:$0xff] }
   0x5   :  { %154 = vmatpush3.msra.mxu0 %v30_v1  ;;  %v132_v18 = vld [vmem:[%s233_s3] sm:$0xff] }
   0x6   :  { %155 = vmatprep.subr.mxu0 %v29_v4 }
   0x7   :  { %156 = vmatpush3.msra.mxu0 %v29_v4 }
   0x8   :  { %157 = vmatprep.subr.mxu0 %v28_v5  ;;  %v25_v7 = vld [vmem:[#allocation2 + $0x8] sm:$0xff]  ;;  %v24_v9 = vld [vmem:[#allocation2] sm:$0xff] }
   0x9   :  { %158 = vmatpush3.msra.mxu0 %v28_v5 }
   0xa   :  { %160 = vmatmul.mubr.msk.f32.vlgmr.msra.gmra.mxu0 %vm21_vm0, %v27_v6 }
  0xca   :  { %v161_v8 = vpop.f32.mrf.mxu0 }
  0xcb   :  { %v115_v10 = vadd.f32 %v161_v8, %v25_v7 }
  0xcc   :  { %v105_v11 = vpop.f32.mrf.mxu0 }
  0xcd   :  { %117 = vst.msk [vmem:[#allocation2 + $0x8] sm:$0xff] %vm21_vm0, %v115_v10  ;;  %v114_v12 = vadd.f32 %v105_v11, %v24_v9 }
  0xcf   :  { %116 = vst.msk [vmem:[#allocation2] sm:$0xff] %vm21_vm0, %v114_v12 }
  0xd4   :  { %v122_v14 = vld [vmem:[#allocation2 + $0x8] sm:$0xff] }
  0xd5   :  { %v131_v16 = vadd.f32 %v144_v13, %v122_v14 }
  0xd6   :  { %v121_v17 = vld [vmem:[#allocation2] sm:$0xff] }
  0xd7   :  { %v135_v19 = vadd.f32 %v133_v15, %v131_v16  ;;  %v130_v20 = vadd.f32 %v144_v13, %v121_v17 }
  0xd9   :  { %137 = vst.msk [vmem:[%s234_s4 + $0x8] sm:$0xff] %vm21_vm0, %v135_v19  ;;  %v134_v21 = vadd.f32 %v132_v18, %v130_v20 }
  0xdb   :  { %136 = vst.msk [vmem:[%s234_s4] sm:$0xff] %vm21_vm0, %v134_v21 }

// kernel: _lambda_.8
= control target key start
LH: loop header
LB: loop body
LE: loop exit
PB: predicated region body
PF: predicated region fallthrough
CT: control target
= control target key end

     0   :  { %17 = vsyncpa [#allocation3], 0  ;;  %s726_s0 = inlined_call_operand.vmem [shape: f32[16,32], index: 0, kind: input, shape index: {}]   ;;  %s727_s1 = inlined_call_operand.vmem [shape: f32[1,32], index: 1, kind: input, shape index: {}]   ;;  %s728_s2 = inlined_call_operand.hbm [shape: f32[1,32], index: 2, kind: input, shape index: {}]   ;;  %s729_s3 = inlined_call_operand.vmem [shape: f32[32,32], index: 3, kind: input, shape index: {}]   ;;  %s730_s4 = inlined_call_operand.hbm [shape: f32[1,32], index: 4, kind: input, shape index: {}]   ;;  %s731_s5 = inlined_call_operand.vmem [shape: f32[32,32], index: 5, kind: input, shape index: {}]   ;;  %s732_s6 = inlined_call_operand.hbm [shape: f32[1,32], index: 6, kind: input, shape index: {}]   ;;  %s733_s7 = inlined_call_operand.vmem [shape: f32[32,32], index: 7, kind: input, shape index: {}]   ;;  %s734_s8 = inlined_call_operand.hbm [shape: f32[1,32], index: 8, kind: input, shape index: {}]   ;;  %s735_s9 = inlined_call_operand.vmem [shape: f32[16,32], index: 9, kind: output, shape index: {0}]   ;;  %s736_s10 = inlined_call_operand.vmem [shape: f32[16,32], index: 10, kind: output, shape index: {1}]   ;;  %s737_s11 = inlined_call_operand.vmem [shape: f32[16,32], index: 11, kind: output, shape index: {2}]  }
   0x1   :  { %18 = vsyncpa [#allocation5], 0 }
   0x2   :  { %19 = vsyncpa [#allocation8], 0  ;;  %s571_s17 = smov [#allocation4]   ;;  %s572_s19 = smov [#allocation2]  }
   0x3   :  { %s42_s18 = sshll.u32 %s571_s17, 4  ;;  %s30_s20 = sshll.u32 %s572_s19, 4  ;;  %s43_s18 = int_to_ptr.vmem [resolvable:$true] %s42_s18  ;;  %s31_s20 = int_to_ptr.vmem [resolvable:$true] %s30_s20 }
   0x4   :  { %s493_s21 = scalar_lea.vmem %s43_s18, 16  ;;  %s497_s22 = scalar_lea.vmem %s43_s18, 32 }
   0x5   :  { %p494_p0 = scmp.ne.s32.totalorder %s43_s18, %s493_s21  ;;  %p498_p1 = scmp.lt.s32.totalorder %s43_s18, %s43_s18 }
   0x6   :  { %p499_p2 = scmp.lt.s32.totalorder %s497_s22, %s493_s21 }
   0x8   :  { %p500_p3 = por %p499_p2, %p498_p1 }
   0xa   :  { %p501_p4 = pnand %p500_p3, %p494_p0 }
   0xc   :  { %504 = shalt.err (!%p501_p4)
}
   0xd   :  { %45 = dma.hbm_to_vmem [thread:$0]  %s730_s4, 16, %s43_s18, [#allocation5]  }
   0xe   :  { %s513_s25 = scalar_lea.vmem %s31_s20, 16  ;;  %s517_s26 = scalar_lea.vmem %s31_s20, 32 }
   0xf   :  { %p514_p5 = scmp.ne.s32.totalorder %s31_s20, %s513_s25  ;;  %p518_p6 = scmp.lt.s32.totalorder %s31_s20, %s31_s20 }
  0x10   :  { %p519_p7 = scmp.lt.s32.totalorder %s517_s26, %s513_s25 }
  0x12   :  { %p520_p8 = por %p519_p7, %p518_p6 }
  0x14   :  { %p521_p9 = pnand %p520_p8, %p514_p5 }
  0x16   :  { %524 = shalt.err (!%p521_p9)
}
  0x17   :  { %33 = dma.hbm_to_vmem [thread:$0]  %s728_s2, 16, %s31_s20, [#allocation3]  }
  0x18   :  { %s573_s29 = smov [#allocation6]   ;;  %s574_s12 = smov [#allocation7]  }
  0x19   :  { %s54_s30 = sshll.u32 %s573_s29, 4  ;;  %s66_s13 = sshll.u32 %s574_s12, 4  ;;  %s55_s30 = int_to_ptr.vmem [resolvable:$true] %s54_s30  ;;  %s67_s13 = int_to_ptr.vmem [resolvable:$true] %s66_s13 }
  0x1a   :  { %s533_s14 = scalar_lea.vmem %s55_s30, 16  ;;  %s537_s4 = scalar_lea.vmem %s55_s30, 32 }
  0x1b   :  { %p534_p10 = scmp.ne.s32.totalorder %s55_s30, %s533_s14  ;;  %p538_p11 = scmp.lt.s32.totalorder %s55_s30, %s55_s30 }
  0x1c   :  { %p539_p12 = scmp.lt.s32.totalorder %s537_s4, %s533_s14 }
  0x1e   :  { %p540_p13 = por %p539_p12, %p538_p11 }
  0x20   :  { %p541_p0 = pnand %p540_p13, %p534_p10 }
  0x22   :  { %544 = shalt.err (!%p541_p0)
}
  0x23   :  { %57 = dma.hbm_to_vmem [thread:$0]  %s732_s6, 16, %s55_s30, [#allocation5]  }
  0x24   :  { %s553_s17 = scalar_lea.vmem %s67_s13, 16  ;;  %s557_s2 = scalar_lea.vmem %s67_s13, 32 }
  0x25   :  { %p554_p1 = scmp.ne.s32.totalorder %s67_s13, %s553_s17  ;;  %p558_p2 = scmp.lt.s32.totalorder %s67_s13, %s67_s13 }
  0x26   :  { %p559_p3 = scmp.lt.s32.totalorder %s557_s2, %s553_s17 }
  0x28   :  { %p560_p4 = por %p559_p3, %p558_p2 }
  0x2a   :  { %p561_p5 = pnand %p560_p4, %p554_p1 }
  0x2c   :  { %564 = shalt.err (!%p561_p5)
}
  0x2d   :  { %69 = dma.hbm_to_vmem [thread:$0]  %s734_s8, 16, %s67_s13, [#allocation8]  }
  0x2e   :  { %565 = dma.done.wait [#allocation3], 16  }
  0x2f   :  { %566 = vsyncadd [#allocation3], 4294967280 }
  0x30   :  { %567 = dma.done.wait [#allocation5], 32  }
  0x31   :  { %568 = vsyncadd [#allocation5], 4294967264 }
  0x32   :  { %569 = dma.done.wait [#allocation8], 16  }
  0x33   :  { %570 = vsyncadd [#allocation8], 4294967280  ;;  %vm84_vm0 = vcmask 261120   ;;  %v82_v0 = vld [vmem:[%s726_s0] sm:$0xff]  ;;  %v83_v1 = vld [vmem:[%s726_s0 + $0x8] sm:$0xff] }
  0x34   :  { %v85_v2 = vsel %vm84_vm0, %v82_v0, 0.0  ;;  %v88_v3 = vsel %vm84_vm0, %v83_v1, 0.0  ;;  %v133_v14 = vld [vmem:[%s729_s3 + $0x18] sm:$0xff]  ;;  %v132_v16 = vld [vmem:[%s729_s3 + $0x10] sm:$0xff]  ;;  %v131_v18 = vld [vmem:[%s729_s3 + $0x8] sm:$0xff] }
  0x35   :  { %86 = vadd.xlane.f32.xlu0 %v85_v2  ;;  %v227_v15 = vld [vmem:[%s731_s5 + $0x18] sm:$0xff]  ;;  %444 = vmatprep.subr.mxu0 %v133_v14  ;;  %v226_v17 = vld [vmem:[%s731_s5 + $0x10] sm:$0xff]  ;;  %v225_v19 = vld [vmem:[%s731_s5 + $0x8] sm:$0xff] }
  0x36   :  { %455 = vmatprep.subr.mxu1 %v227_v15  ;;  %445 = vmatpush3.msra.mxu0 %v133_v14  ;;  %v130_v20 = vld [vmem:[%s729_s3] sm:$0xff]  ;;  %v315_v22 = vld [vmem:[%s733_s7 + $0x18] sm:$0xff]  ;;  %v314_v39 = vld [vmem:[%s733_s7 + $0x10] sm:$0xff] }
  0x37   :  { %456 = vmatpush3.msra.mxu1 %v227_v15  ;;  %446 = vmatprep.subr.mxu0 %v132_v16  ;;  %v224_v21 = vld [vmem:[%s731_s5] sm:$0xff]  ;;  %v313_v40 = vld [vmem:[%s733_s7 + $0x8] sm:$0xff] }
  0x38   :  { %457 = vmatprep.subr.mxu1 %v226_v17  ;;  %447 = vmatpush3.msra.mxu0 %v132_v16  ;;  %v415_v30 = vld [vmem:[%s727_s1] ss:$0 sm:$0xff]  ;;  %v417_v42 = vld [vmem:[#allocation4] ss:$0 sm:$0xff]  ;;  %v420_v43 = vld [vmem:[#allocation6] ss:$0 sm:$0xff] }
  0x39   :  { %89 = vadd.xlane.f32.xlu0 %v88_v3  ;;  %458 = vmatpush3.msra.mxu1 %v226_v17  ;;  %v416_v32 = vld [vmem:[#allocation2] ss:$0 sm:$0xff]  ;;  %v423_v52 = vld [vmem:[#allocation7] ss:$0 sm:$0xff] }
  0x3a   :  { %448 = vmatprep.subr.mxu0 %v131_v18  ;;  %459 = vmatprep.subr.mxu1 %v225_v19  ;;  %v312_v41 = vld [vmem:[%s733_s7] sm:$0xff] }
  0x3b   :  { %449 = vmatpush3.msra.mxu0 %v131_v18  ;;  %460 = vmatpush3.msra.mxu1 %v225_v19 }
  0x3c   :  { %450 = vmatprep.subr.mxu0 %v130_v20  ;;  %461 = vmatprep.subr.mxu1 %v224_v21 }
  0x3d   :  { %451 = vmatpush3.msra.mxu0 %v130_v20  ;;  %462 = vmatpush3.msra.mxu1 %v224_v21 }
  0x3e   :  { %466 = vmatprep.subr.mxu0 %v315_v22 }
  0xbe   :  { %v87_v4 = vpop.xlane.xlu0 %86 }
  0xbf   :  { %v92_v5 = vmul.f32 0.03125, %v87_v4 }
  0xc1   :  { %v94_v6 = vsub.f32 %v82_v0, %v92_v5 }
  0xc2   :  { %v90_v7 = vpop.xlane.xlu0 %89 }
  0xc3   :  { %v93_v8 = vmul.f32 0.03125, %v90_v7  ;;  %v96_v9 = vmul.f32 %v94_v6, %v94_v6 }
  0xc5   :  { %v95_v10 = vsub.f32 %v83_v1, %v93_v8  ;;  %v98_v11 = vsel %vm84_vm0, %v96_v9, 0.0 }
  0xc6   :  { %99 = vadd.xlane.f32.xlu1 %v98_v11 }
  0xc7   :  { %v97_v12 = vmul.f32 %v95_v10, %v95_v10 }
  0xc9   :  { %v101_v13 = vsel %vm84_vm0, %v97_v12, 0.0 }
  0xca   :  { %102 = vadd.xlane.f32.xlu1 %v101_v13 }
 0x14f   :  { %v100_v23 = vpop.xlane.xlu1 %99 }
 0x150   :  { %v104_v24 = vmul.f32 0.03125, %v100_v23 }
 0x152   :  { %v106_v25 = vadd.f32 1e-06, %v104_v24 }
 0x153   :  { %v103_v26 = vpop.xlane.xlu1 %102 }
 0x154   :  { %481 = vrsqrt.f32 %v106_v25  ;;  %v105_v27 = vmul.f32 0.03125, %v103_v26 }
 0x156   :  { %v107_v28 = vadd.f32 1e-06, %v105_v27 }
 0x158   :  { %483 = vrsqrt.f32 %v107_v28 }
 0x161   :  { %v482_v29 = vpop.eup %481 }
 0x162   :  { %v110_v31 = vmul.f32 %v482_v29, %v94_v6 }
 0x164   :  { %v119_v33 = vmul.f32 %v415_v30, %v110_v31 }
 0x165   :  { %v484_v34 = vpop.eup %483 }
 0x166   :  { %v111_v35 = vmul.f32 %v484_v34, %v95_v10  ;;  %v128_v36 = vadd.f32 %v416_v32, %v119_v33 }
 0x168   :  { %v120_v37 = vmul.f32 %v415_v30, %v111_v35  ;;  %452 = vmatprep.mubr.msk.f32.mxu0 %vm84_vm0, %v128_v36  ;;  %463 = vmatprep.mubr.msk.f32.mxu1 %vm84_vm0, %v128_v36 }
 0x16a   :  { %v129_v38 = vadd.f32 %v416_v32, %v120_v37 }
 0x16c   :  { %453 = vmatmul.mubr.msk.f32.vlgmr.msra.gmra.mxu0 %vm84_vm0, %v129_v38  ;;  %464 = vmatmul.mubr.msk.f32.vlgmr.msra.gmra.mxu1 %vm84_vm0, %v129_v38 }
 0x16d   :  { %467 = vmatpush3.msra.mxu0 %v315_v22  ;;  %474 = vmatprep.mubr.msk.f32.mxu0 %vm84_vm0, %v128_v36 }
 0x16e   :  { %468 = vmatprep.subr.mxu0 %v314_v39 }
 0x16f   :  { %469 = vmatpush3.msra.mxu0 %v314_v39 }
 0x170   :  { %470 = vmatprep.subr.mxu0 %v313_v40 }
 0x171   :  { %471 = vmatpush3.msra.mxu0 %v313_v40 }
 0x172   :  { %472 = vmatprep.subr.mxu0 %v312_v41 }
 0x173   :  { %473 = vmatpush3.msra.mxu0 %v312_v41 }
 0x174   :  { %475 = vmatmul.mubr.msk.f32.vlgmr.msra.gmra.mxu0 %vm84_vm0, %v129_v38 }
 0x22c   :  { %v454_v44 = vpop.f32.mrf.mxu0  ;;  %v465_v45 = vpop.f32.mrf.mxu1 }
 0x22d   :  { %v219_v46 = vadd.f32 %v454_v44, %v417_v42  ;;  %v307_v47 = vadd.f32 %v465_v45, %v420_v43 }
 0x22e   :  { %v213_v48 = vpop.f32.mrf.mxu0  ;;  %v301_v49 = vpop.f32.mrf.mxu1 }
 0x22f   :  { %223 = vst.msk [vmem:[%s735_s9 + $0x8] sm:$0xff] %vm84_vm0, %v219_v46  ;;  %311 = vst.msk [vmem:[%s736_s10 + $0x8] sm:$0xff] %vm84_vm0, %v307_v47  ;;  %v214_v50 = vadd.f32 %v417_v42, %v213_v48  ;;  %v302_v51 = vadd.f32 %v420_v43, %v301_v49 }
 0x231   :  { %222 = vst.msk [vmem:[%s735_s9] sm:$0xff] %vm84_vm0, %v214_v50  ;;  %310 = vst.msk [vmem:[%s736_s10] sm:$0xff] %vm84_vm0, %v302_v51 }
 0x234   :  { %v476_v53 = vpop.f32.mrf.mxu0 }
 0x235   :  { %v395_v54 = vadd.f32 %v476_v53, %v423_v52 }
 0x236   :  { %v389_v55 = vpop.f32.mrf.mxu0 }
 0x237   :  { %399 = vst.msk [vmem:[%s737_s11 + $0x8] sm:$0xff] %vm84_vm0, %v395_v54  ;;  %v390_v56 = vadd.f32 %v423_v52, %v389_v55 }
 0x239   :  { %398 = vst.msk [vmem:[%s737_s11] sm:$0xff] %vm84_vm0, %v390_v56 }
 0x23a   :  { %412 = vsyncpa [#allocation3], 1 }
 0x23b   :  { %413 = vsyncpa [#allocation5], 1 }
 0x23c   :  { %414 = vsyncpa [#allocation8], 1 }

// kernel: _lambda_.9
= control target key start
LH: loop header
LB: loop body
LE: loop exit
PB: predicated region body
PF: predicated region fallthrough
CT: control target
= control target key end

     0   :  { %s1176_s15 = smov 0   ;;  %s1282_s0 = inlined_call_operand.vmem [shape: f32[2,8,32], index: 0, kind: input, shape index: {}]   ;;  %s1283_s1 = inlined_call_operand.vmem [shape: f32[2,8,32], index: 1, kind: input, shape index: {}]   ;;  %s1284_s2 = inlined_call_operand.vmem [shape: f32[2,8,32], index: 2, kind: input, shape index: {}]   ;;  %s1285_s3 = inlined_call_operand.vmem [shape: f32[2,1,8], index: 3, kind: input, shape index: {}]   ;;  %s1286_s4 = inlined_call_operand.vmem [shape: f32[2,8,32], index: 4, kind: output, shape index: {}]  }
   0x1 LB: > { %s1022_s16 = sadd.s32 4294967295, %s1140_s15   ;;  %p1026_p0 = scmp.ge.s32.totalorder %s1140_s15, 1  ;;  %s1140_s15 = sphi %s1176_s15, %s14_s15  }
   0x2   : > { %p187_p1 = scmp.lt.s32.totalorder %s1140_s15, 3 }
   0x4   : > { %p188_p2 = pnand %p1026_p0, %p187_p1 }
   0x5   : > { %p222_p3 = scmp.lt.s32.totalorder (!%p188_p2), %s1022_s16, 1  ;;  %s1145_s27 = smov (!%p188_p2), 120  }
   0x6   : > { %191 = sbr.rel (%p188_p2) target bundleno = 1401 (0x579), region = 36  ;;  %s1146_s28 = smov (!%p188_p2), 112  }
   0x7   : > { %s1147_s29 = smov (!%p188_p2), 104   ;;  %s1148_s7 = smov (!%p188_p2), 8  }
   0x8   : > { %s1149_s8 = smov (!%p188_p2), 16   ;;  %s1150_s9 = smov (!%p188_p2), 24  }
   0xb   : > { %v1142_v0 = vmov 0.0   ;;  %vm1143_vm0 = vmmov 0   ;;  %s1288_s16 = smov (!%p222_p3, %s1022_s16), 1  ;;  %vm246_vm1 = vcmask 64512   ;;  %v325_v3 = vlaneseq }
   0xc   : > { %1061 = vmatprep.subr.mxu0 %v1142_v0  ;;  %1063 = vmatprep.mubr.msk.f32.mxu0 %vm1143_vm0, %v1142_v0  ;;  %s1190_s17 = sshll.u32 %s1288_s16, 3  ;;  %s236_s26 = scalar_lea.vmem %s1285_s3, %s1288_s16  ;;  %v1144_v7 = vmov 0   ;;  %vm930_vm4 = vcmask 130048   ;;  %vm932_vm5 = vcmask 195584   ;;  %vm934_vm6 = vcmask 261120  }
   0xd   : > { %1066 = vmatprep.subr.mxu1 %v1142_v0  ;;  %1068 = vmatprep.mubr.msk.f32.mxu1 %vm1143_vm0, %v1142_v0  ;;  %s229_s20 = scalar_lea.vmem %s1283_s1, %s1190_s17  ;;  %s225_s23 = scalar_lea.vmem %s1282_s0, %s1190_s17  ;;  %v244_v4 = vld [vmem:[%s236_s26] sm:$0x1]  ;;  %v326_v5 = vshrl.u32 %v325_v3, 7 }
   0xe   : > { %v242_v1 = vld [vmem:[%s229_s20] sm:$0xff]  ;;  %vm245_vm2 = vcmp.gt.f32.partialorder %v244_v4, 0.5  ;;  %s233_s6 = scalar_lea.vmem %s1284_s2, %s1190_s17  ;;  %s240_s12 = scalar_lea.vmem %s1286_s4, %s1190_s17 }
   0xf   : > { %1062 = vmatpush3.xpose.msk.msra.mxu0 %vm246_vm1, %v242_v1  ;;  %v241_v2 = vld [vmem:[%s225_s23] sm:$0xff]  ;;  %v327_v6 = vsub.s32 0, %v326_v5  ;;  %v324_v8 = vsel %vm245_vm2, 1, %v1144_v7  ;;  %417 = vrot.lane.b32.xlu1 %v242_v1, %s1145_s27 }
  0x10   : > { %1076 = vmatprep.subr.mxu0 %v1142_v0  ;;  %v1224_v20 = vld [vmem:[%s233_s6] sm:$0xff] }
  0x11   : > { %v1208_v9 = vrot.slane %v324_v8, %v327_v6  ;;  %1067 = vmatpush3.msra.mxu1 %v1224_v20 }
  0x12   : > { %1064 = vmatmul.mubr.msk.f32.vlgmr.msra.gmra.mxu0 %vm246_vm1, %v241_v2  ;;  %1071 = vmatprep.subr.mxu1 %v1142_v0 }
  0x13   : > { %1078 = vmatprep.mubr.msk.f32.mxu0 %vm1143_vm0, %v1142_v0  ;;  %vm329_vm3 = vcmp.eq.s32.totalorder %v1208_v9, 1  ;;  %415 = vrot.lane.b32.xlu1 %v241_v2, %s1145_s27 }
  0x17   : > { %583 = vrot.lane.b32.xlu1 %v241_v2, %s1146_s28 }
  0x1b   : > { %752 = vrot.lane.b32.xlu1 %v242_v1, %s1147_s29 }
  0x1f   : > { %750 = vrot.lane.b32.xlu1 %v241_v2, %s1147_s29 }
  0x81   : > { %v418_v22 = vpop.permute.xlu1 %417 }
  0x85   : > { %v416_v23 = vpop.permute.xlu1 %415 }
  0x89   : > { %v584_v25 = vpop.permute.xlu1 %583 }
  0x8d   : > { %v753_v28 = vpop.permute.xlu1 %752 }
  0x91   : > { %v751_v29 = vpop.permute.xlu1 %750 }
  0xd2   : > { %v319_v10 = vpop.f32.mrf.mxu0 }
  0xd3   : > { %v323_v11 = vmul.f32 0.35355338, %v319_v10 }
  0xd4   : > { %v1065_v12 = vpop.f32.mrf.mxu0 }
  0xd5   : > { %v330_v13 = vsel %vm329_vm3, -1e+18, %v323_v11 }
  0xd6   : > { %v331_v14 = vsel %vm246_vm1, %v330_v13, -inf }
  0xd7   : > { %332 = vmax.xlane.f32.xlu0 %v331_v14 }
 0x160   : > { %v333_v15 = vpop.xlane.xlu0 %332 }
 0x161   : > { %v334_v16 = vsub.f32 %v330_v13, %v333_v15 }
 0x163   : > { %v335_v17 = vmul.f32 1.442695, %v334_v16 }
 0x165   : > { %1118 = vpow2.f32 %v335_v17 }
 0x172   : > { %v1119_v18 = vpop.eup %1118 }
 0x173   : > { %v337_v19 = vsel %vm246_vm1, %v1119_v18, 0.0 }
 0x174   : > { %338 = vadd.xlane.f32.xlu0 %v337_v19 }
 0x18a   : > { %585 = vrot.lane.b32.xlu0 %v242_v1, %s1146_s28 }
 0x1fd   : > { %v339_v21 = vpop.xlane.xlu0 %338 }
 0x1fe   : > { %1120 = vrcp.f32 %v339_v21 }
 0x201   : > { %v586_v27 = vpop.permute.xlu0 %585 }
 0x20b   : > { %v1121_v24 = vpop.eup %1120 }
 0x20c   : > { %v341_v26 = vmul.f32 %v1121_v24, %v1119_v18 }
 0x20e   : > { %1069 = vmatmul.mubr.msk.f32.vlgmr.msra.gmra.mxu1 %vm246_vm1, %v341_v26 }
 0x20f   : > { %1072 = vmatpush3.xpose.msk.msra.mxu1 %vm246_vm1, %v418_v22  ;;  %1073 = vmatprep.mubr.msk.f32.mxu1 %vm1143_vm0, %v1142_v0 }
 0x210   : > { %1081 = vmatprep.subr.mxu1 %v1142_v0 }
 0x212   : > { %1074 = vmatmul.mubr.msk.f32.vlgmr.msra.gmra.mxu1 %vm246_vm1, %v416_v23 }
 0x213   : > { %1082 = vmatpush3.xpose.msk.msra.mxu1 %vm246_vm1, %v586_v27  ;;  %1083 = vmatprep.mubr.msk.f32.mxu1 %vm1143_vm0, %v1142_v0 }
 0x214   : > { %1091 = vmatprep.subr.mxu1 %v1142_v0 }
 0x216   : > { %1084 = vmatmul.mubr.msk.f32.vlgmr.msra.gmra.mxu1 %vm246_vm1, %v584_v25 }
 0x217   : > { %1092 = vmatpush3.xpose.msk.msra.mxu1 %vm246_vm1, %v753_v28  ;;  %1093 = vmatprep.mubr.msk.f32.mxu1 %vm1143_vm0, %v1142_v0 }
 0x21a   : > { %1094 = vmatmul.mubr.msk.f32.vlgmr.msra.gmra.mxu1 %vm246_vm1, %v751_v29 }
 0x2ce   : > { %v1244_v30 = vpop.f32.mrf.mxu1 }
 0x2d0   : > { %v1070_v31 = vpop.f32.mrf.mxu1 }
 0x2d2   : > { %v489_v32 = vpop.f32.mrf.mxu1 }
 0x2d3   : > { %v493_v33 = vmul.f32 0.35355338, %v489_v32 }
 0x2d4   : > { %v1075_v34 = vpop.f32.mrf.mxu1 }
 0x2d5   : > { %v494_v35 = vsel %vm329_vm3, -1e+18, %v493_v33 }
 0x2d6   : > { %v657_v36 = vpop.f32.mrf.mxu1  ;;  %v495_v37 = vsel %vm246_vm1, %v494_v35, -inf }
 0x2d7   : > { %v661_v38 = vmul.f32 0.35355338, %v657_v36  ;;  %496 = vmax.xlane.f32.xlu1 %v495_v37 }
 0x2d8   : > { %v1085_v39 = vpop.f32.mrf.mxu1 }
 0x2d9   : > { %v662_v40 = vsel %vm329_vm3, -1e+18, %v661_v38 }
 0x2da   : > { %v824_v41 = vpop.f32.mrf.mxu1  ;;  %v663_v42 = vsel %vm246_vm1, %v662_v40, -inf }
 0x2db   : > { %v828_v43 = vmul.f32 0.35355338, %v824_v41  ;;  %664 = vmax.xlane.f32.xlu0 %v663_v42 }
 0x2dc   : > { %v1095_v44 = vpop.f32.mrf.mxu1 }
 0x2dd   : > { %v829_v45 = vsel %vm329_vm3, -1e+18, %v828_v43 }
 0x2de   : > { %v830_v46 = vsel %vm246_vm1, %v829_v45, -inf }
 0x2df   : > { %831 = vmax.xlane.f32.xlu1 %v830_v46 }
 0x360   : > { %v497_v47 = vpop.xlane.xlu1 %496 }
 0x361   : > { %v498_v48 = vsub.f32 %v494_v35, %v497_v47 }
 0x363   : > { %v499_v49 = vmul.f32 1.442695, %v498_v48 }
 0x364   : > { %v665_v50 = vpop.xlane.xlu0 %664 }
 0x365   : > { %1122 = vpow2.f32 %v499_v49  ;;  %v666_v51 = vsub.f32 %v662_v40, %v665_v50 }
 0x367   : > { %v667_v52 = vmul.f32 1.442695, %v666_v51 }
 0x368   : > { %v832_v57 = vpop.xlane.xlu1 %831 }
 0x369   : > { %1124 = vpow2.f32 %v667_v52  ;;  %v833_v58 = vsub.f32 %v829_v45, %v832_v57 }
 0x36b   : > { %v834_v59 = vmul.f32 1.442695, %v833_v58 }
 0x36d   : > { %1126 = vpow2.f32 %v834_v59 }
 0x372   : > { %v1123_v53 = vpop.eup %1122 }
 0x373   : > { %v501_v54 = vsel %vm246_vm1, %v1123_v53, 0.0 }
 0x374   : > { %502 = vadd.xlane.f32.xlu1 %v501_v54 }
 0x376   : > { %v1125_v55 = vpop.eup %1124 }
 0x377   : > { %v669_v56 = vsel %vm246_vm1, %v1125_v55, 0.0 }
 0x378   : > { %670 = vadd.xlane.f32.xlu0 %v669_v56 }
 0x37a   : > { %v1127_v60 = vpop.eup %1126 }
 0x37b   : > { %v836_v61 = vsel %vm246_vm1, %v1127_v60, 0.0 }
 0x385   : > { %674 = vrot.lane.b32.xlu1 %v1224_v20, %s1146_s28 }
 0x38e   : > { %507 = vrot.lane.b32.xlu0 %v1224_v20, %s1145_s27 }
 0x3a9   : > { %837 = vadd.xlane.f32.xlu1 %v836_v61 }
 0x3ba   : > { %841 = vrot.lane.b32.xlu1 %v1224_v20, %s1147_s29 }
 0x3fd   : > { %v503_v62 = vpop.xlane.xlu1 %502 }
 0x3fe   : > { %1128 = vrcp.f32 %v503_v62 }
 0x401   : > { %v671_v63 = vpop.xlane.xlu0 %670  ;;  %v675_v4 = vpop.permute.xlu1 %674 }
 0x402   : > { %1130 = vrcp.f32 %v671_v63 }
 0x405   : > { %v508_v1 = vpop.permute.xlu0 %507 }
 0x406   : > { %1077 = vmatpush3.msra.mxu0 %v508_v1 }
 0x407   : > { %1086 = vmatprep.subr.mxu0 %v1142_v0 }
 0x40b   : > { %v1129_v2 = vpop.eup %1128 }
 0x40c   : > { %v505_v3 = vmul.f32 %v1129_v2, %v1123_v53 }
 0x40e   : > { %1079 = vmatmul.mubr.msk.f32.vlgmr.msra.gmra.mxu0 %vm246_vm1, %v505_v3 }
 0x40f   : > { %v1131_v5 = vpop.eup %1130  ;;  %1087 = vmatpush3.msra.mxu0 %v675_v4  ;;  %1088 = vmatprep.mubr.msk.f32.mxu0 %vm1143_vm0, %v1142_v0 }
 0x410   : > { %v673_v6 = vmul.f32 %v1131_v5, %v1125_v55  ;;  %1096 = vmatprep.subr.mxu0 %v1142_v0 }
 0x412   : > { %1089 = vmatmul.mubr.msk.f32.vlgmr.msra.gmra.mxu0 %vm246_vm1, %v673_v6 }
 0x413   : > { %1098 = vmatprep.mubr.msk.f32.mxu0 %vm1143_vm0, %v1142_v0 }
 0x432   : > { %v838_v7 = vpop.xlane.xlu1 %837 }
 0x433   : > { %1132 = vrcp.f32 %v838_v7 }
 0x436   : > { %v842_v8 = vpop.permute.xlu1 %841 }
 0x437   : > { %1097 = vmatpush3.msra.mxu0 %v842_v8 }
 0x440   : > { %v1133_v9 = vpop.eup %1132 }
 0x441   : > { %v840_v10 = vmul.f32 %v1133_v9, %v1127_v60 }
 0x443   : > { %1099 = vmatmul.mubr.msk.f32.vlgmr.msra.gmra.mxu0 %vm246_vm1, %v840_v10 }
 0x4ce   : > { %v579_v11 = vpop.f32.mrf.mxu0 }
 0x4cf   : > { %918 = vrot.lane.b32.xlu0 %v579_v11, %s1148_s7 }
 0x4d0   : > { %v1080_v12 = vpop.f32.mrf.mxu0 }
 0x4d2   : > { %v746_v13 = vpop.f32.mrf.mxu0 }
 0x4d3   : > { %922 = vrot.lane.b32.xlu1 %v746_v13, %s1149_s8 }
 0x4d4   : > { %v1090_v14 = vpop.f32.mrf.mxu0 }
 0x503   : > { %v913_v15 = vpop.f32.mrf.mxu0 }
 0x504   : > { %926 = vrot.lane.b32.xlu0 %v913_v15, %s1150_s9 }
 0x505   : > { %v1100_v0 = vpop.f32.mrf.mxu0 }
 0x541   : > { %v919_v16 = vpop.permute.xlu0 %918 }
 0x542   : > { %v929_v18 = vsel %vm246_vm1, %v1244_v30, %v919_v16 }
 0x545   : > { %v923_v17 = vpop.permute.xlu1 %922 }
 0x546   : > { %v931_v19 = vsel %vm930_vm4, %v929_v18, %v923_v17 }
 0x576   : > { %v927_v20 = vpop.permute.xlu0 %926 }
 0x577   : > { %v933_v21 = vsel %vm932_vm5, %v931_v19, %v927_v20 }
 0x578   : > { %935 = vst.msk [vmem:[%s240_s12] sm:$0xff] %vm934_vm6, %v933_v21 }
 0x579 PF: > { %s14_s15 = sadd.s32 1, %s1140_s15  }
 0x57a   : > { %p11_p4 = scmp.ge.s32.totalorder %s14_s15, 4  }
 0x57c   :  { %13 = sbr.rel (!%p11_p4) target bundleno = 1 (0x1), region = 75 }

// kernel: _lambda_.11
= control target key start
LH: loop header
LB: loop body
LE: loop exit
PB: predicated region body
PF: predicated region fallthrough
CT: control target
= control target key end

     0   :  { %vm22_vm0 = vcmask 261120   ;;  %s263_s0 = inlined_call_operand.vmem [shape: f32[16,32], index: 0, kind: input, shape index: {}]   ;;  %s264_s3 = inlined_call_operand.vmem [shape: f32[32,32], index: 3, kind: input, shape index: {}]   ;;  %s265_s1 = inlined_call_operand.vmem [shape: f32[1,32], index: 1, kind: input, shape index: {}]   ;;  %s266_s2 = inlined_call_operand.vmem [shape: f32[1,32], index: 2, kind: input, shape index: {}]   ;;  %s267_s4 = inlined_call_operand.vmem [shape: f32[1,32], index: 4, kind: input, shape index: {}]   ;;  %s268_s5 = inlined_call_operand.vmem [shape: f32[16,32], index: 5, kind: output, shape index: {}]  }
   0x1   :  { %v20_v0 = vld [vmem:[%s263_s0] sm:$0xff]  ;;  %v21_v1 = vld [vmem:[%s263_s0 + $0x8] sm:$0xff]  ;;  %v71_v14 = vld [vmem:[%s264_s3 + $0x18] sm:$0xff] }
   0x2   :  { %v23_v2 = vsel %vm22_vm0, %v20_v0, 0.0  ;;  %v26_v3 = vsel %vm22_vm0, %v21_v1, 0.0  ;;  %v70_v15 = vld [vmem:[%s264_s3 + $0x10] sm:$0xff]  ;;  %177 = vmatprep.subr.mxu0 %v71_v14  ;;  %v69_v16 = vld [vmem:[%s264_s3 + $0x8] sm:$0xff]  ;;  %v68_v17 = vld [vmem:[%s264_s3] sm:$0xff] }
   0x3   :  { %24 = vadd.xlane.f32.xlu0 %v23_v2  ;;  %178 = vmatpush3.msra.mxu0 %v71_v14  ;;  %v166_v25 = vld [vmem:[%s265_s1] ss:$0 sm:$0xff] }
   0x4   :  { %179 = vmatprep.subr.mxu0 %v70_v15  ;;  %v167_v27 = vld [vmem:[%s266_s2] ss:$0 sm:$0xff] }
   0x5   :  { %180 = vmatpush3.msra.mxu0 %v70_v15  ;;  %v168_v34 = vld [vmem:[%s267_s4] ss:$0 sm:$0xff] }
   0x6   :  { %181 = vmatprep.subr.mxu0 %v69_v16 }
   0x7   :  { %27 = vadd.xlane.f32.xlu0 %v26_v3  ;;  %182 = vmatpush3.msra.mxu0 %v69_v16 }
   0x8   :  { %183 = vmatprep.subr.mxu0 %v68_v17 }
   0x9   :  { %184 = vmatpush3.msra.mxu0 %v68_v17 }
  0x8c   :  { %v25_v4 = vpop.xlane.xlu0 %24 }
  0x8d   :  { %v30_v5 = vmul.f32 0.03125, %v25_v4 }
  0x8f   :  { %v32_v6 = vsub.f32 %v20_v0, %v30_v5 }
  0x90   :  { %v28_v7 = vpop.xlane.xlu0 %27 }
  0x91   :  { %v31_v8 = vmul.f32 0.03125, %v28_v7  ;;  %v34_v9 = vmul.f32 %v32_v6, %v32_v6 }
  0x93   :  { %v33_v10 = vsub.f32 %v21_v1, %v31_v8  ;;  %v36_v11 = vsel %vm22_vm0, %v34_v9, 0.0 }
  0x94   :  { %37 = vadd.xlane.f32.xlu1 %v36_v11 }
  0x95   :  { %v35_v12 = vmul.f32 %v33_v10, %v33_v10 }
  0x97   :  { %v39_v13 = vsel %vm22_vm0, %v35_v12, 0.0 }
  0x98   :  { %40 = vadd.xlane.f32.xlu1 %v39_v13 }
 0x11d   :  { %v38_v18 = vpop.xlane.xlu1 %37 }
 0x11e   :  { %v42_v19 = vmul.f32 0.03125, %v38_v18 }
 0x120   :  { %v44_v20 = vadd.f32 1e-06, %v42_v19 }
 0x121   :  { %v41_v21 = vpop.xlane.xlu1 %40 }
 0x122   :  { %188 = vrsqrt.f32 %v44_v20  ;;  %v43_v22 = vmul.f32 0.03125, %v41_v21 }
 0x124   :  { %v45_v23 = vadd.f32 1e-06, %v43_v22 }
 0x126   :  { %190 = vrsqrt.f32 %v45_v23 }
 0x12f   :  { %v189_v24 = vpop.eup %188 }
 0x130   :  { %v48_v26 = vmul.f32 %v189_v24, %v32_v6 }
 0x132   :  { %v57_v28 = vmul.f32 %v166_v25, %v48_v26 }
 0x133   :  { %v191_v29 = vpop.eup %190 }
 0x134   :  { %v49_v30 = vmul.f32 %v191_v29, %v33_v10  ;;  %v66_v31 = vadd.f32 %v167_v27, %v57_v28 }
 0x136   :  { %v58_v32 = vmul.f32 %v166_v25, %v49_v30  ;;  %185 = vmatprep.mubr.msk.f32.mxu0 %vm22_vm0, %v66_v31 }
 0x138   :  { %v67_v33 = vadd.f32 %v167_v27, %v58_v32 }
 0x13a   :  { %186 = vmatmul.mubr.msk.f32.vlgmr.msra.gmra.mxu0 %vm22_vm0, %v67_v33 }
 0x1fa   :  { %v187_v35 = vpop.f32.mrf.mxu0 }
 0x1fb   :  { %v157_v36 = vadd.f32 %v187_v35, %v168_v34 }
 0x1fc   :  { %v151_v37 = vpop.f32.mrf.mxu0 }
 0x1fd   :  { %161 = vst.msk [vmem:[%s268_s5 + $0x8] sm:$0xff] %vm22_vm0, %v157_v36  ;;  %v152_v38 = vadd.f32 %v168_v34, %v151_v37 }
 0x1ff   :  { %160 = vst.msk [vmem:[%s268_s5] sm:$0xff] %vm22_vm0, %v152_v38 }

// kernel: _lambda_.13
= control target key start
LH: loop header
LB: loop body
LE: loop exit
PB: predicated region body
PF: predicated region fallthrough
CT: control target
= control target key end

     0   :  { %s1209_s15 = smov 0   ;;  %s1325_s0 = inlined_call_operand.vmem [shape: f32[2,8,32], index: 0, kind: input, shape index: {}]   ;;  %s1326_s1 = inlined_call_operand.vmem [shape: f32[2,4,32], index: 1, kind: input, shape index: {}]   ;;  %s1327_s2 = inlined_call_operand.vmem [shape: f32[2,4,32], index: 2, kind: input, shape index: {}]   ;;  %s1328_s3 = inlined_call_operand.vmem [shape: f32[2,8,32], index: 3, kind: output, shape index: {0}]   ;;  %s1329_s4 = inlined_call_operand.vmem [shape: f32[2,4,8,4], index: 4, kind: output, shape index: {1}]  }
   0x1 LB: > { %s1047_s16 = sadd.s32 4294967295, %s1174_s15   ;;  %p1051_p0 = scmp.ge.s32.totalorder %s1174_s15, 1  ;;  %s1174_s15 = sphi %s1209_s15, %s15_s15  }
   0x2   : > { %p182_p1 = scmp.lt.s32.totalorder %s1174_s15, 3 }
   0x4   : > { %p183_p2 = pnand %p1051_p0, %p182_p1 }
   0x5   : > { %p219_p3 = scmp.lt.s32.totalorder (!%p183_p2), %s1047_s16, 1  ;;  %s1178_s25 = smov (!%p183_p2), 120  }
   0x6   : > { %186 = sbr.rel (%p183_p2) target bundleno = 1399 (0x577), region = 32  ;;  %s1179_s26 = smov (!%p183_p2), 112  }
   0x7   : > { %s1180_s27 = smov (!%p183_p2), 104   ;;  %s1181_s9 = smov (!%p183_p2), 8  }
   0x8   : > { %s1182_s10 = smov (!%p183_p2), 16   ;;  %s1183_s11 = smov (!%p183_p2), 24  }
   0xb   : > { %v1176_v0 = vmov 0.0   ;;  %vm1177_vm0 = vmmov 0   ;;  %s1331_s16 = smov (!%p219_p3, %s1047_s16), 1  ;;  %vm243_vm1 = vcmask 64512   ;;  %vm321_vm2 = vcmask 31744  }
   0xc   : > { %1096 = vmatprep.subr.mxu0 %v1176_v0  ;;  %1098 = vmatprep.mubr.msk.f32.mxu0 %vm1177_vm0, %v1176_v0  ;;  %s1053_s17 = sshll.u32 %s1331_s16, 2  ;;  %s1052_s21 = sshll.u32 %s1331_s16, 3  ;;  %vm337_vm3 = vcmask 1043456   ;;  %vm931_vm4 = vcmask 130048   ;;  %vm933_vm5 = vcmask 195584   ;;  %vm935_vm6 = vcmask 261120  }
   0xd   : > { %1101 = vmatprep.subr.mxu1 %v1176_v0  ;;  %1103 = vmatprep.mubr.msk.f32.mxu1 %vm1177_vm0, %v1176_v0  ;;  %s226_s20 = scalar_lea.vmem %s1326_s1, %s1053_s17  ;;  %s222_s24 = scalar_lea.vmem %s1325_s0, %s1052_s21 }
   0xe   : > { %v241_v1 = vld [vmem:[%s226_s20] sm:$0xf]  ;;  %s230_s30 = scalar_lea.vmem %s1327_s2, %s1053_s17  ;;  %s1079_s5 = sshll.u32 %s1331_s16, 5 }
   0xf   : > { %1097 = vmatpush3.xpose.msk.msra.mxu0 %vm243_vm1, %v241_v1  ;;  %v240_v2 = vld [vmem:[%s222_s24] sm:$0xff]  ;;  %413 = vrot.lane.b32.xlu1 %v241_v1, %s1178_s25  ;;  %s1264_s8 = scalar_lea.vmem %s1329_s4, %s1079_s5  ;;  %s234_s14 = scalar_lea.vmem %s1328_s3, %s1052_s21 }
  0x10   : > { %1111 = vmatprep.subr.mxu0 %v1176_v0  ;;  %v1254_v12 = vld [vmem:[%s230_s30] sm:$0xf] }
  0x11   : > { %1102 = vmatpush3.msk.msra.mxu1 %vm337_vm3, %v1254_v12 }
  0x12   : > { %1099 = vmatmul.mubr.msk.f32.vlgmr.msra.gmra.mxu0 %vm243_vm1, %v240_v2  ;;  %1106 = vmatprep.subr.mxu1 %v1176_v0 }
  0x13   : > { %1113 = vmatprep.mubr.msk.f32.mxu0 %vm1177_vm0, %v1176_v0  ;;  %411 = vrot.lane.b32.xlu1 %v240_v2, %s1178_s25 }
  0x17   : > { %580 = vrot.lane.b32.xlu1 %v240_v2, %s1179_s26 }
  0x1b   : > { %751 = vrot.lane.b32.xlu1 %v241_v1, %s1180_s27 }
  0x1f   : > { %749 = vrot.lane.b32.xlu1 %v240_v2, %s1180_s27 }
  0x81   : > { %v414_v14 = vpop.permute.xlu1 %413 }
  0x85   : > { %v412_v15 = vpop.permute.xlu1 %411 }
  0x89   : > { %v581_v17 = vpop.permute.xlu1 %580 }
  0x8d   : > { %v752_v20 = vpop.permute.xlu1 %751 }
  0x91   : > { %v750_v21 = vpop.permute.xlu1 %749 }
  0xd2   : > { %v316_v3 = vpop.f32.mrf.mxu0 }
  0xd3   : > { %v320_v4 = vmul.f32 0.35355338, %v316_v3 }
  0xd4   : > { %v1100_v5 = vpop.f32.mrf.mxu0 }
  0xd5   : > { %v322_v6 = vsel %vm321_vm2, %v320_v4, -inf }
  0xd6   : > { %323 = vmax.xlane.f32.xlu0 %v322_v6 }
 0x15f   : > { %v324_v7 = vpop.xlane.xlu0 %323 }
 0x160   : > { %v325_v8 = vsub.f32 %v320_v4, %v324_v7 }
 0x162   : > { %v326_v9 = vmul.f32 1.442695, %v325_v8 }
 0x164   : > { %1152 = vpow2.f32 %v326_v9 }
 0x171   : > { %v1153_v10 = vpop.eup %1152 }
 0x172   : > { %v328_v11 = vsel %vm321_vm2, %v1153_v10, 0.0 }
 0x173   : > { %329 = vadd.xlane.f32.xlu0 %v328_v11 }
 0x189   : > { %582 = vrot.lane.b32.xlu0 %v241_v1, %s1179_s26 }
 0x1fc   : > { %v330_v13 = vpop.xlane.xlu0 %329 }
 0x1fd   : > { %1154 = vrcp.f32 %v330_v13 }
 0x200   : > { %v583_v19 = vpop.permute.xlu0 %582 }
 0x20a   : > { %v1155_v16 = vpop.eup %1154 }
 0x20b   : > { %v332_v18 = vmul.f32 %v1155_v16, %v1153_v10 }
 0x20d   : > { %333 = vst.msk [vmem:[%s1264_s8] sm:$0xff] %vm321_vm2, %v332_v18  ;;  %1104 = vmatmul.mubr.msk.f32.vlgmr.msra.gmra.mxu1 %vm321_vm2, %v332_v18 }
 0x20e   : > { %1107 = vmatpush3.xpose.msk.msra.mxu1 %vm243_vm1, %v414_v14  ;;  %1108 = vmatprep.mubr.msk.f32.mxu1 %vm1177_vm0, %v1176_v0 }
 0x20f   : > { %1116 = vmatprep.subr.mxu1 %v1176_v0 }
 0x211   : > { %1109 = vmatmul.mubr.msk.f32.vlgmr.msra.gmra.mxu1 %vm243_vm1, %v412_v15 }
 0x212   : > { %1117 = vmatpush3.xpose.msk.msra.mxu1 %vm243_vm1, %v583_v19  ;;  %1118 = vmatprep.mubr.msk.f32.mxu1 %vm1177_vm0, %v1176_v0 }
 0x213   : > { %1126 = vmatprep.subr.mxu1 %v1176_v0 }
 0x215   : > { %1119 = vmatmul.mubr.msk.f32.vlgmr.msra.gmra.mxu1 %vm243_vm1, %v581_v17 }
 0x216   : > { %1127 = vmatpush3.xpose.msk.msra.mxu1 %vm243_vm1, %v752_v20  ;;  %1128 = vmatprep.mubr.msk.f32.mxu1 %vm1177_vm0, %v1176_v0 }
 0x219   : > { %1129 = vmatmul.mubr.msk.f32.vlgmr.msra.gmra.mxu1 %vm243_vm1, %v750_v21 }
 0x2cd   : > { %v1283_v22 = vpop.f32.mrf.mxu1 }
 0x2cf   : > { %v1105_v23 = vpop.f32.mrf.mxu1 }
 0x2d1   : > { %v485_v24 = vpop.f32.mrf.mxu1 }
 0x2d2   : > { %v489_v25 = vmul.f32 0.35355338, %v485_v24 }
 0x2d3   : > { %v1110_v26 = vpop.f32.mrf.mxu1 }
 0x2d4   : > { %v490_v27 = vsel %vm321_vm2, %v489_v25, -inf }
 0x2d5   : > { %491 = vmax.xlane.f32.xlu1 %v490_v27  ;;  %v654_v28 = vpop.f32.mrf.mxu1 }
 0x2d6   : > { %v658_v29 = vmul.f32 0.35355338, %v654_v28 }
 0x2d7   : > { %v1120_v30 = vpop.f32.mrf.mxu1 }
 0x2d8   : > { %v659_v31 = vsel %vm321_vm2, %v658_v29, -inf }
 0x2d9   : > { %660 = vmax.xlane.f32.xlu0 %v659_v31  ;;  %v823_v32 = vpop.f32.mrf.mxu1 }
 0x2da   : > { %v827_v33 = vmul.f32 0.35355338, %v823_v32 }
 0x2db   : > { %v1130_v34 = vpop.f32.mrf.mxu1 }
 0x2dc   : > { %v828_v35 = vsel %vm321_vm2, %v827_v33, -inf }
 0x2dd   : > { %829 = vmax.xlane.f32.xlu1 %v828_v35 }
 0x35e   : > { %v492_v36 = vpop.xlane.xlu1 %491 }
 0x35f   : > { %v493_v37 = vsub.f32 %v489_v25, %v492_v36 }
 0x361   : > { %v494_v38 = vmul.f32 1.442695, %v493_v37 }
 0x362   : > { %v661_v39 = vpop.xlane.xlu0 %660 }
 0x363   : > { %1156 = vpow2.f32 %v494_v38  ;;  %v662_v40 = vsub.f32 %v658_v29, %v661_v39 }
 0x365   : > { %v663_v41 = vmul.f32 1.442695, %v662_v40 }
 0x366   : > { %v830_v46 = vpop.xlane.xlu1 %829 }
 0x367   : > { %1158 = vpow2.f32 %v663_v41  ;;  %v831_v47 = vsub.f32 %v827_v33, %v830_v46 }
 0x369   : > { %v832_v48 = vmul.f32 1.442695, %v831_v47 }
 0x36b   : > { %1160 = vpow2.f32 %v832_v48 }
 0x370   : > { %v1157_v42 = vpop.eup %1156 }
 0x371   : > { %v496_v43 = vsel %vm321_vm2, %v1157_v42, 0.0 }
 0x372   : > { %497 = vadd.xlane.f32.xlu1 %v496_v43 }
 0x374   : > { %v1159_v44 = vpop.eup %1158 }
 0x375   : > { %v665_v45 = vsel %vm321_vm2, %v1159_v44, 0.0 }
 0x376   : > { %666 = vadd.xlane.f32.xlu0 %v665_v45 }
 0x378   : > { %v1161_v49 = vpop.eup %1160 }
 0x379   : > { %v834_v50 = vsel %vm321_vm2, %v1161_v49, 0.0 }
 0x383   : > { %672 = vrot.lane.b32.xlu1 %v1254_v12, %s1179_s26 }
 0x38c   : > { %503 = vrot.lane.b32.xlu0 %v1254_v12, %s1178_s25 }
 0x3a7   : > { %835 = vadd.xlane.f32.xlu1 %v834_v50 }
 0x3b8   : > { %841 = vrot.lane.b32.xlu1 %v1254_v12, %s1180_s27 }
 0x3fb   : > { %v498_v51 = vpop.xlane.xlu1 %497 }
 0x3fc   : > { %1162 = vrcp.f32 %v498_v51 }
 0x3ff   : > { %v667_v52 = vpop.xlane.xlu0 %666  ;;  %v673_v56 = vpop.permute.xlu1 %672 }
 0x400   : > { %1164 = vrcp.f32 %v667_v52 }
 0x403   : > { %v504_v53 = vpop.permute.xlu0 %503 }
 0x404   : > { %1112 = vmatpush3.msk.msra.mxu0 %vm337_vm3, %v504_v53 }
 0x405   : > { %1121 = vmatprep.subr.mxu0 %v1176_v0 }
 0x409   : > { %v1163_v54 = vpop.eup %1162 }
 0x40a   : > { %v500_v55 = vmul.f32 %v1163_v54, %v1157_v42 }
 0x40c   : > { %1064 = vst.msk [vmem:[%s1264_s8 + $0x8] sm:$0xff] %vm321_vm2, %v500_v55  ;;  %1114 = vmatmul.mubr.msk.f32.vlgmr.msra.gmra.mxu0 %vm321_vm2, %v500_v55 }
 0x40d   : > { %v1165_v57 = vpop.eup %1164  ;;  %1122 = vmatpush3.msk.msra.mxu0 %vm337_vm3, %v673_v56  ;;  %1123 = vmatprep.mubr.msk.f32.mxu0 %vm1177_vm0, %v1176_v0 }
 0x40e   : > { %v669_v58 = vmul.f32 %v1165_v57, %v1159_v44  ;;  %1131 = vmatprep.subr.mxu0 %v1176_v0 }
 0x410   : > { %1069 = vst.msk [vmem:[%s1264_s8 + $0x10] sm:$0xff] %vm321_vm2, %v669_v58  ;;  %1124 = vmatmul.mubr.msk.f32.vlgmr.msra.gmra.mxu0 %vm321_vm2, %v669_v58 }
 0x411   : > { %1133 = vmatprep.mubr.msk.f32.mxu0 %vm1177_vm0, %v1176_v0 }
 0x430   : > { %v836_v59 = vpop.xlane.xlu1 %835 }
 0x431   : > { %1166 = vrcp.f32 %v836_v59 }
 0x434   : > { %v842_v60 = vpop.permute.xlu1 %841 }
 0x435   : > { %1132 = vmatpush3.msk.msra.mxu0 %vm337_vm3, %v842_v60 }
 0x43e   : > { %v1167_v61 = vpop.eup %1166 }
 0x43f   : > { %v838_v62 = vmul.f32 %v1167_v61, %v1161_v49 }
 0x441   : > { %1074 = vst.msk [vmem:[%s1264_s8 + $0x18] sm:$0xff] %vm321_vm2, %v838_v62  ;;  %1134 = vmatmul.mubr.msk.f32.vlgmr.msra.gmra.mxu0 %vm321_vm2, %v838_v62 }
 0x4cc   : > { %v576_v63 = vpop.f32.mrf.mxu0 }
 0x4cd   : > { %919 = vrot.lane.b32.xlu0 %v576_v63, %s1181_s9 }
 0x4ce   : > { %v1115_v1 = vpop.f32.mrf.mxu0 }
 0x4d0   : > { %v745_v2 = vpop.f32.mrf.mxu0 }
 0x4d1   : > { %923 = vrot.lane.b32.xlu1 %v745_v2, %s1182_s10 }
 0x4d2   : > { %v1125_v0 = vpop.f32.mrf.mxu0 }
 0x501   : > { %v914_v3 = vpop.f32.mrf.mxu0 }
 0x502   : > { %927 = vrot.lane.b32.xlu0 %v914_v3, %s1183_s11 }
 0x503   : > { %v1135_v4 = vpop.f32.mrf.mxu0 }
 0x53f   : > { %v920_v5 = vpop.permute.xlu0 %919 }
 0x540   : > { %v930_v7 = vsel %vm243_vm1, %v1283_v22, %v920_v5 }
 0x543   : > { %v924_v6 = vpop.permute.xlu1 %923 }
 0x544   : > { %v932_v8 = vsel %vm931_vm4, %v930_v7, %v924_v6 }
 0x574   : > { %v928_v9 = vpop.permute.xlu0 %927 }
 0x575   : > { %v934_v10 = vsel %vm933_vm5, %v932_v8, %v928_v9 }
 0x576   : > { %936 = vst.msk [vmem:[%s234_s14] sm:$0xff] %vm935_vm6, %v934_v10 }
 0x577 PF: > { %s15_s15 = sadd.s32 1, %s1174_s15  }
 0x578   : > { %p12_p4 = scmp.ge.s32.totalorder %s15_s15, 4  }
 0x57a   :  { %14 = sbr.rel (!%p12_p4) target bundleno = 1 (0x1), region = 83 }

// kernel: _lambda_.15
= control target key start
LH: loop header
LB: loop body
LE: loop exit
PB: predicated region body
PF: predicated region fallthrough
CT: control target
= control target key end

     0   :  { %vm33_vm0 = vcmask 261120   ;;  %s521_s0 = inlined_call_operand.vmem [shape: f32[16,32], index: 0, kind: input, shape index: {}]   ;;  %s522_s1 = inlined_call_operand.vmem [shape: f32[1,32], index: 1, kind: input, shape index: {}]   ;;  %s523_s2 = inlined_call_operand.vmem [shape: f32[1,32], index: 2, kind: input, shape index: {}]   ;;  %s524_s3 = inlined_call_operand.vmem [shape: f32[32,64], index: 3, kind: input, shape index: {}]   ;;  %s525_s4 = inlined_call_operand.vmem [shape: f32[1,64], index: 4, kind: input, shape index: {}]   ;;  %s526_s5 = inlined_call_operand.vmem [shape: f32[64,32], index: 5, kind: input, shape index: {}]   ;;  %s527_s6 = inlined_call_operand.vmem [shape: f32[1,32], index: 6, kind: input, shape index: {}]   ;;  %s528_s7 = inlined_call_operand.hbm [shape: f32[16,32], index: 7, kind: output, shape index: {}]  }
   0x1   :  { %v443_v0 = vld [vmem:[%s521_s0] sm:$0xff]  ;;  %v448_v1 = vld [vmem:[%s521_s0 + $0x8] sm:$0xff] }
   0x2   :  { %12 = vsyncpa [#allocation5], 0  ;;  %v34_v2 = vsel %vm33_vm0, %v443_v0, 0.0  ;;  %v37_v3 = vsel %vm33_vm0, %v448_v1, 0.0  ;;  %v88_v14 = vld [vmem:[%s524_s3 + $0x18] sm:$0xff]  ;;  %v87_v15 = vld [vmem:[%s524_s3 + $0x10] sm:$0xff] }
   0x3   :  { %35 = vadd.xlane.f32.xlu0 %v34_v2  ;;  %336 = vmatprep.subr.mxu0 %v88_v14  ;;  %v86_v16 = vld [vmem:[%s524_s3 + $0x8] sm:$0xff]  ;;  %v85_v17 = vld [vmem:[%s524_s3] sm:$0xff]  ;;  %v189_v18 = vld [vmem:[%s526_s5 + $0x38] sm:$0xff]  ;;  %v396_v44 = vmov 0.0   ;;  %vm190_vm1 = vcmask 523264   ;;  %s397_s30 = smov [#allocation4]  }
   0x4   :  { %337 = vmatpush3.msra.mxu0 %v88_v14  ;;  %v188_v19 = vld [vmem:[%s526_s5 + $0x30] sm:$0xff]  ;;  %347 = vmatprep.subr.mxu1 %v189_v18  ;;  %v187_v20 = vld [vmem:[%s526_s5 + $0x28] sm:$0xff]  ;;  %v186_v21 = vld [vmem:[%s526_s5 + $0x20] sm:$0xff]  ;;  %82 = vst.msk [vmem:[#allocation3 + $0x8] sm:$0xff] %vm33_vm0, %v396_v44  ;;  %s301_s8 = sshll.u32 %s397_s30, 4  ;;  %s302_s8 = int_to_ptr.vmem [resolvable:$true] %s301_s8 }
   0x5   :  { %338 = vmatprep.subr.mxu0 %v87_v15  ;;  %348 = vmatpush3.msra.mxu1 %v189_v18  ;;  %v312_v29 = vld [vmem:[%s522_s1] ss:$0 sm:$0xff]  ;;  %v185_v40 = vld [vmem:[%s526_s5 + $0x18] sm:$0xff]  ;;  %v184_v41 = vld [vmem:[%s526_s5 + $0x10] sm:$0xff]  ;;  %81 = vst.msk [vmem:[#allocation3] sm:$0xff] %vm33_vm0, %v396_v44  ;;  %s374_s9 = scalar_lea.vmem %s302_s8, 256  ;;  %p379_p1 = scmp.lt.s32.totalorder %s302_s8, %s302_s8 }
   0x6   :  { %339 = vmatpush3.msra.mxu0 %v87_v15  ;;  %349 = vmatprep.subr.mxu1 %v188_v19  ;;  %v313_v31 = vld [vmem:[%s523_s2] ss:$0 sm:$0xff]  ;;  %v183_v42 = vld [vmem:[%s526_s5 + $0x8] sm:$0xff]  ;;  %p375_p0 = scmp.ne.s32.totalorder %s302_s8, %s374_s9  ;;  %p380_p2 = scmp.lt.s32.totalorder %s374_s9, %s374_s9 }
   0x7   :  { %38 = vadd.xlane.f32.xlu0 %v37_v3  ;;  %340 = vmatprep.subr.mxu0 %v86_v16  ;;  %v182_v43 = vld [vmem:[%s526_s5] sm:$0xff] }
   0x8   :  { %341 = vmatpush3.msra.mxu0 %v86_v16  ;;  %350 = vmatpush3.msra.mxu1 %v188_v19  ;;  %v314_v45 = vld [vmem:[%s525_s4] ss:$0 sm:$0xff]  ;;  %p381_p3 = por %p380_p2, %p379_p1 }
   0x9   :  { %342 = vmatprep.subr.mxu0 %v85_v17  ;;  %351 = vmatprep.subr.mxu1 %v187_v20  ;;  %v319_v58 = vld [vmem:[%s527_s6] ss:$0 sm:$0xff] }
   0xa   :  { %343 = vmatpush3.msra.mxu0 %v85_v17  ;;  %352 = vmatpush3.msra.mxu1 %v187_v20  ;;  %p382_p4 = pnand %p381_p3, %p375_p0 }
   0xb   :  { %353 = vmatprep.subr.mxu1 %v186_v21  ;;  %v181_v52 = vld [vmem:[#allocation3 + $0x8] sm:$0xff] }
   0xc   :  { %354 = vmatpush3.msra.mxu1 %v186_v21  ;;  %v180_v54 = vld [vmem:[#allocation3] sm:$0xff] }
   0xd   :  { %355 = vmatprep.subr.mxu1 %v185_v40 }
   0xe   :  { %356 = vmatpush3.msra.mxu1 %v185_v40 }
   0xf   :  { %357 = vmatprep.subr.mxu1 %v184_v41 }
  0x10   :  { %358 = vmatpush3.msra.mxu1 %v184_v41 }
  0x11   :  { %359 = vmatprep.subr.mxu1 %v183_v42 }
  0x12   :  { %360 = vmatpush3.msra.mxu1 %v183_v42 }
  0x13   :  { %361 = vmatprep.subr.mxu1 %v182_v43 }
  0x14   :  { %362 = vmatpush3.msra.mxu1 %v182_v43 }
  0x8c   :  { %v36_v4 = vpop.xlane.xlu0 %35 }
  0x8d   :  { %v41_v5 = vmul.f32 0.03125, %v36_v4 }
  0x8f   :  { %v43_v6 = vsub.f32 %v443_v0, %v41_v5 }
  0x90   :  { %v39_v7 = vpop.xlane.xlu0 %38 }
  0x91   :  { %v42_v8 = vmul.f32 0.03125, %v39_v7  ;;  %v45_v9 = vmul.f32 %v43_v6, %v43_v6 }
  0x93   :  { %v44_v10 = vsub.f32 %v448_v1, %v42_v8  ;;  %v47_v11 = vsel %vm33_vm0, %v45_v9, 0.0 }
  0x94   :  { %48 = vadd.xlane.f32.xlu1 %v47_v11 }
  0x95   :  { %v46_v12 = vmul.f32 %v44_v10, %v44_v10 }
  0x97   :  { %v50_v13 = vsel %vm33_vm0, %v46_v12, 0.0 }
  0x98   :  { %51 = vadd.xlane.f32.xlu1 %v50_v13 }
 0x11d   :  { %v49_v22 = vpop.xlane.xlu1 %48 }
 0x11e   :  { %v53_v23 = vmul.f32 0.03125, %v49_v22 }
 0x120   :  { %v55_v24 = vadd.f32 1e-06, %v53_v23 }
 0x121   :  { %v52_v25 = vpop.xlane.xlu1 %51 }
 0x122   :  { %370 = vrsqrt.f32 %v55_v24  ;;  %v54_v26 = vmul.f32 0.03125, %v52_v25 }
 0x124   :  { %v56_v27 = vadd.f32 1e-06, %v54_v26 }
 0x126   :  { %372 = vrsqrt.f32 %v56_v27 }
 0x12f   :  { %v371_v28 = vpop.eup %370 }
 0x130   :  { %v59_v30 = vmul.f32 %v371_v28, %v43_v6 }
 0x132   :  { %v68_v32 = vmul.f32 %v312_v29, %v59_v30 }
 0x133   :  { %v373_v33 = vpop.eup %372 }
 0x134   :  { %v77_v34 = vadd.f32 %v313_v31, %v68_v32  ;;  %v60_v35 = vmul.f32 %v373_v33, %v44_v10 }
 0x136   :  { %79 = vst.msk [vmem:[#allocation2] sm:$0xff] %vm33_vm0, %v77_v34  ;;  %v69_v36 = vmul.f32 %v312_v29, %v60_v35 }
 0x138   :  { %v78_v37 = vadd.f32 %v313_v31, %v69_v36 }
 0x13a   :  { %80 = vst.msk [vmem:[#allocation2 + $0x8] sm:$0xff] %vm33_vm0, %v78_v37 }
 0x13d   :  { %v83_v38 = vld [vmem:[#allocation2] sm:$0xff] }
 0x13e   :  { %344 = vmatprep.mubr.msk.f32.mxu0 %vm33_vm0, %v83_v38 }
 0x141   :  { %v84_v39 = vld [vmem:[#allocation2 + $0x8] sm:$0xff] }
 0x142   :  { %345 = vmatmul.mubr.msk.f32.vlgmr.msra.gmra.mxu0 %vm33_vm0, %v84_v39 }
 0x202   :  { %v346_v46 = vpop.f32.mrf.mxu0 }
 0x203   :  { %v175_v47 = vadd.f32 %v346_v46, %v314_v45 }
 0x204   :  { %v169_v48 = vpop.f32.mrf.mxu0 }
 0x205   :  { %v170_v49 = vadd.f32 %v314_v45, %v169_v48  ;;  %v179_v51 = vmax.f32 %v175_v47, 0.0 }
 0x207   :  { %v178_v50 = vmax.f32 %v170_v49, 0.0 }
 0x209   :  { %363 = vmatprep.mubr.msk.f32.mxu1 %vm190_vm1, %v178_v50 }
 0x20a   :  { %364 = vmatmul.mubr.msk.f32.vlgmr.msra.gmra.mxu1 %vm190_vm1, %v179_v51 }
 0x2ca   :  { %v365_v53 = vpop.f32.mrf.mxu1 }
 0x2cb   :  { %v273_v55 = vadd.f32 %v365_v53, %v181_v52 }
 0x2cc   :  { %v263_v56 = vpop.f32.mrf.mxu1 }
 0x2cd   :  { %275 = vst.msk [vmem:[#allocation3 + $0x8] sm:$0xff] %vm33_vm0, %v273_v55  ;;  %v272_v57 = vadd.f32 %v263_v56, %v180_v54 }
 0x2cf   :  { %274 = vst.msk [vmem:[#allocation3] sm:$0xff] %vm33_vm0, %v272_v57 }
 0x2d4   :  { %v280_v59 = vld [vmem:[#allocation3 + $0x8] sm:$0xff] }
 0x2d5   :  { %v289_v60 = vadd.f32 %v319_v58, %v280_v59 }
 0x2d6   :  { %v279_v61 = vld [vmem:[#allocation3] sm:$0xff] }
 0x2d7   :  { %v288_v62 = vadd.f32 %v319_v58, %v279_v61  ;;  %v293_v63 = vadd.f32 %v289_v60, %v448_v1 }
 0x2d9   :  { %v292_v2 = vadd.f32 %v288_v62, %v443_v0  ;;  %295 = vst.msk [vmem:[#allocation4 + $0x8] sm:$0xff] %vm33_vm0, %v293_v63 }
 0x2db   :  { %294 = vst.msk [vmem:[#allocation4] sm:$0xff] %vm33_vm0, %v292_v2 }
 0x2dc   :  { %385 = shalt.err (!%p382_p4)
}
 0x2dd   :  { %s398_s6 = smov 128   ;;  %s399_s10 = smov 8  }
 0x2de   :  { %307 = dma.vmem_to_hbm [thread:$0]  %s302_s8, 256, %s528_s7, [#allocation5], %s398_s6, %s398_s6, %s399_s10  }
 0x2df   :  { %394 = dma.done.wait [#allocation5], 256  }
 0x2e0   :  { %395 = vsyncadd [#allocation5], 4294967040 }
 0x2e1   :  { %311 = vsyncpa [#allocation5], 1 }

</bundles_post_ra>
